<compile_context>
chip_gen: v5e
topology: v5e:2x2
jax: 0.10.0
libtpu: 0.0.40
codegen_flags: <defaults>
</compile_context>

<pallas_src>
import jax
import jax.numpy as jnp
from jax.experimental import pallas as pl
from jax.experimental.pallas import tpu as pltpu

IN_DIM = 784
HID_DIM = 512
OUT_DIM = 256


def _round_up(x, m):
    return (x + m - 1) // m * m


def _choose_tb(B):
    """Batch tile size: 16-aligned; >=2 grid steps for mid/large batches."""
    b16 = _round_up(B, 16)
    if b16 <= 128:
        return b16                      # tiny batch: one tight block
    half = _round_up((B + 1) // 2, 16)  # guarantee >= 2 grid steps (v7x dual-TC)
    return min(1024, half)              # cap to amortize per-step overhead


def mlp_kernel(x_ref, w1_ref, b1_ref, w2_ref, b2_ref, o_ref):
    # Cast activations to bf16 in-kernel (free VPU filler under the MXU dot).
    x = x_ref[...].astype(jnp.bfloat16)
    # fc1: (TB, 784) bf16 @ (784, 512) bf16 -> f32 accumulate
    h = jnp.dot(x, w1_ref[...], preferred_element_type=jnp.float32)
    # bias add + ReLU in f32 (keep elementwise math f32 for v5e)
    h = jnp.maximum(h + b1_ref[...], 0.0)
    # fc2: (TB, 512) bf16 @ (512, 256) bf16 -> f32 accumulate
    out = jnp.dot(h.astype(jnp.bfloat16), w2_ref[...],
                  preferred_element_type=jnp.float32)
    o_ref[...] = (out + b2_ref[...]).astype(o_ref.dtype)


def prepare_params(w1, b1, w2, b2):
    """Cast weights to bf16 once, outside the hot path (no K padding).

    w1: (784, 512), b1: (512,), w2: (512, 256), b2: (256,)  (f32)
    """
    w1_b = w1.astype(jnp.bfloat16)
    w2_b = w2.astype(jnp.bfloat16)
    b1_2d = b1.reshape(1, HID_DIM).astype(jnp.float32)
    b2_2d = b2.reshape(1, OUT_DIM).astype(jnp.float32)
    return w1_b, b1_2d, w2_b, b2_2d


def submodel1_forward(x, w1_b, b1_2d, w2_b, b2_2d):
    """x: any shape with total elements divisible by 784 (flattened to (-1, 784))."""
    x2d = x.reshape(-1, IN_DIM)          # stays f32; bf16 cast happens in-kernel
    B = x2d.shape[0]

    TB = _choose_tb(B)
    grid = pl.cdiv(B, TB)                # ragged last block: masked writes

    out = pl.pallas_call(
        mlp_kernel,
        out_shape=jax.ShapeDtypeStruct((B, OUT_DIM), jnp.float32),
        grid=(grid,),
        in_specs=[
            # activations: tiled along the batch axis, full-K block (784)
            pl.BlockSpec((TB, IN_DIM), lambda i: (i, 0)),
            # weights / biases: constant index_map -> stay resident across steps
            pl.BlockSpec((IN_DIM, HID_DIM), lambda i: (0, 0)),
            pl.BlockSpec((1, HID_DIM), lambda i: (0, 0)),
            pl.BlockSpec((HID_DIM, OUT_DIM), lambda i: (0, 0)),
            pl.BlockSpec((1, OUT_DIM), lambda i: (0, 0)),
        ],
        out_specs=pl.BlockSpec((TB, OUT_DIM), lambda i: (i, 0)),
        compiler_params=pltpu.CompilerParams(
            dimension_semantics=("parallel",),
            vmem_limit_bytes=32 * 1024 * 1024),
    )(x2d, w1_b, b1_2d, w2_b, b2_2d)
    return out


def init_params(key):
    """Deterministic init mirroring nn.Linear shapes (stored as (in, out))."""
    k1, k2, k3, k4 = jax.random.split(key, 4)
    lim1 = 1.0 / jnp.sqrt(jnp.float32(IN_DIM))
    lim2 = 1.0 / jnp.sqrt(jnp.float32(HID_DIM))
    w1 = jax.random.uniform(k1, (IN_DIM, HID_DIM), jnp.float32, -lim1, lim1)
    b1 = jax.random.uniform(k2, (HID_DIM,), jnp.float32, -lim1, lim1)
    w2 = jax.random.uniform(k3, (HID_DIM, OUT_DIM), jnp.float32, -lim2, lim2)
    b2 = jax.random.uniform(k4, (OUT_DIM,), jnp.float32, -lim2, lim2)
    return w1, b1, w2, b2


if __name__ == "__main__":
    key = jax.random.PRNGKey(0)
    kx, kp = jax.random.split(key)

    # MNIST-like input: (batch=8, 1, 28, 28); forward flattens to (-1, 784).
    x = jax.random.normal(kx, (8, 1, 28, 28), jnp.float32)
    w1, b1, w2, b2 = init_params(kp)

    # Cast weights once (outside the hot path), then run the kernel.
    params = prepare_params(w1, b1, w2, b2)
    fwd = jax.jit(submodel1_forward)
    out = jax.block_until_ready(fwd(x, *params))

    # Sanity check against plain-JAX references.
    x2d = x.reshape(-1, IN_DIM)
    # bf16-operand reference (same casts as the kernel): tight tolerance.
    h_ref = jnp.maximum(
        jnp.dot(x2d.astype(jnp.bfloat16), w1.astype(jnp.bfloat16),
                preferred_element_type=jnp.float32) + b1, 0.0)
    ref_bf16 = jnp.dot(h_ref.astype(jnp.bfloat16), w2.astype(jnp.bfloat16),
                       preferred_element_type=jnp.float32) + b2
    # full-f32 reference: loose tolerance (bf16 rounding of the operands).
    ref_f32 = jnp.maximum(x2d @ w1 + b1, 0.0) @ w2 + b2

    assert out.shape == (8, OUT_DIM)
    assert jnp.allclose(out, ref_bf16, atol=1e-2, rtol=1e-2)
    assert jnp.allclose(out, ref_f32, atol=5e-2, rtol=5e-2)

    print("KERNEL_OK")
</pallas_src>

<mosaic_0001>
module attributes {stable_mosaic.version = 11 : i64} {
  func.func @mlp_kernel(%arg0: i32, %arg1: memref<16x784xf32, #tpu.memory_space<vmem>>, %arg2: memref<784x512xbf16, #tpu.memory_space<vmem>>, %arg3: memref<1x512xf32, #tpu.memory_space<vmem>>, %arg4: memref<512x256xbf16, #tpu.memory_space<vmem>>, %arg5: memref<1x256xf32, #tpu.memory_space<vmem>>, %arg6: memref<16x256xf32, #tpu.memory_space<vmem>>) attributes {dimension_semantics = [#tpu.dimension_semantics<parallel>], iteration_bounds = array<i64: 1>, scalar_prefetch = 0 : i64, scratch_operands = 0 : i64, tpu.core_type = #tpu.core_type<tc>, window_params = [{transform_indices = @transform_0, window_bounds = array<i64: 16, 784>}, {pipeline_mode = #tpu.pipeline_mode<synchronous>, transform_indices = @transform_1, window_bounds = array<i64: 784, 512>}, {pipeline_mode = #tpu.pipeline_mode<synchronous>, transform_indices = @transform_2, window_bounds = array<i64: 1, 512>}, {pipeline_mode = #tpu.pipeline_mode<synchronous>, transform_indices = @transform_3, window_bounds = array<i64: 512, 256>}, {pipeline_mode = #tpu.pipeline_mode<synchronous>, transform_indices = @transform_4, window_bounds = array<i64: 1, 256>}, {transform_indices = @transform_5, window_bounds = array<i64: 16, 256>}]} {
    %c0 = arith.constant 0 : index
    %c0_0 = arith.constant 0 : index
    %0 = vector.load %arg1[%c0, %c0_0] : memref<16x784xf32, #tpu.memory_space<vmem>>, vector<16x784xf32>
    %1 = arith.truncf %0 : vector<16x784xf32> to vector<16x784xbf16>
    %c0_1 = arith.constant 0 : index
    %c0_2 = arith.constant 0 : index
    %2 = vector.load %arg2[%c0_1, %c0_2] : memref<784x512xbf16, #tpu.memory_space<vmem>>, vector<784x512xbf16>
    %cst = arith.constant dense<0.000000e+00> : vector<16x512xf32>
    %3 = tpu.matmul %1, %2, %cst {dimension_numbers = #tpu.dot_dimension_numbers<[1], [0], [0], [1], [0, 0, 1, 1], [], []>} : vector<16x784xbf16>, vector<784x512xbf16>, vector<16x512xf32> -> vector<16x512xf32>
    %c0_3 = arith.constant 0 : index
    %c0_4 = arith.constant 0 : index
    %4 = vector.load %arg3[%c0_3, %c0_4] : memref<1x512xf32, #tpu.memory_space<vmem>>, vector<1x512xf32>
    %5 = vector.broadcast %4 : vector<1x512xf32> to vector<16x512xf32>
    %6 = arith.addf %3, %5 : vector<16x512xf32>
    %cst_5 = arith.constant 0.000000e+00 : f32
    %7 = vector.broadcast %cst_5 : f32 to vector<16x512xf32>
    %8 = arith.maximumf %6, %7 : vector<16x512xf32>
    %9 = arith.truncf %8 : vector<16x512xf32> to vector<16x512xbf16>
    %c0_6 = arith.constant 0 : index
    %c0_7 = arith.constant 0 : index
    %10 = vector.load %arg4[%c0_6, %c0_7] : memref<512x256xbf16, #tpu.memory_space<vmem>>, vector<512x256xbf16>
    %cst_8 = arith.constant dense<0.000000e+00> : vector<16x256xf32>
    %11 = tpu.matmul %9, %10, %cst_8 {dimension_numbers = #tpu.dot_dimension_numbers<[1], [0], [0], [1], [0, 0, 1, 1], [], []>} : vector<16x512xbf16>, vector<512x256xbf16>, vector<16x256xf32> -> vector<16x256xf32>
    %c0_9 = arith.constant 0 : index
    %c0_10 = arith.constant 0 : index
    %12 = vector.load %arg5[%c0_9, %c0_10] : memref<1x256xf32, #tpu.memory_space<vmem>>, vector<1x256xf32>
    %13 = vector.broadcast %12 : vector<1x256xf32> to vector<16x256xf32>
    %14 = arith.addf %11, %13 : vector<16x256xf32>
    %c0_11 = arith.constant 0 : index
    %c0_12 = arith.constant 0 : index
    %15 = vector.load %arg6[%c0_11, %c0_12] : memref<16x256xf32, #tpu.memory_space<vmem>>, vector<16x256xf32>
    tpu.vector_store %arg6[%c0_11, %c0_12], %14 {strides = array<i32>} : memref<16x256xf32, #tpu.memory_space<vmem>>, vector<16x256xf32>,
    return
  }
  func.func @transform_0(%arg0: i32) -> (i32, i32) {
    %c0_i32 = arith.constant 0 : i32
    %c0_i32_0 = arith.constant 0 : i32
    return %arg0, %c0_i32 : i32, i32
  }
  func.func @transform_1(%arg0: i32) -> (i32, i32) {
    %c0_i32 = arith.constant 0 : i32
    %c0_i32_0 = arith.constant 0 : i32
    %c0_i32_1 = arith.constant 0 : i32
    return %c0_i32, %c0_i32_0 : i32, i32
  }
  func.func @transform_2(%arg0: i32) -> (i32, i32) {
    %c0_i32 = arith.constant 0 : i32
    %c0_i32_0 = arith.constant 0 : i32
    %c0_i32_1 = arith.constant 0 : i32
    return %c0_i32, %c0_i32_0 : i32, i32
  }
  func.func @transform_3(%arg0: i32) -> (i32, i32) {
    %c0_i32 = arith.constant 0 : i32
    %c0_i32_0 = arith.constant 0 : i32
    %c0_i32_1 = arith.constant 0 : i32
    return %c0_i32, %c0_i32_0 : i32, i32
  }
  func.func @transform_4(%arg0: i32) -> (i32, i32) {
    %c0_i32 = arith.constant 0 : i32
    %c0_i32_0 = arith.constant 0 : i32
    %c0_i32_1 = arith.constant 0 : i32
    return %c0_i32, %c0_i32_0 : i32, i32
  }
  func.func @transform_5(%arg0: i32) -> (i32, i32) {
    %c0_i32 = arith.constant 0 : i32
    %c0_i32_0 = arith.constant 0 : i32
    return %arg0, %c0_i32 : i32, i32
  }
}

</mosaic_0001>

<bundles_post_ra>
// kernel: submodel1_forward.1
= control target key start
LH: loop header
LB: loop body
LE: loop exit
PB: predicated region body
PF: predicated region fallthrough
CT: control target
= control target key end

     0   :  { %10 = vsyncpa [#allocation3], 0  ;;  %s4081_s0 = inlined_call_operand.vmem [shape: f32[8,784], index: 0, kind: input, shape index: {}]   ;;  %s4082_s1 = inlined_call_operand.hbm [shape: bf16[784,512], index: 1, kind: input, shape index: {}]   ;;  %s4083_s2 = inlined_call_operand.vmem [shape: f32[1,512], index: 2, kind: input, shape index: {}]   ;;  %s4084_s3 = inlined_call_operand.vmem [shape: bf16[512,256], index: 3, kind: input, shape index: {}]   ;;  %s4085_s4 = inlined_call_operand.vmem [shape: f32[1,256], index: 4, kind: input, shape index: {}]   ;;  %s4086_s5 = inlined_call_operand.hbm [shape: f32[8,256], index: 5, kind: output, shape index: {}]  }
   0x1   :  { %11 = vsyncpa [#allocation4], 0  ;;  %s18_s20 = sshll.u32 %s4082_s1, 4  ;;  %s3538_s21 = smov [#allocation2]   ;;  %s19_s20 = int_to_ptr.hbm [resolvable:$true] %s18_s20 }
   0x2   :  { %s20_s22 = sshll.u32 %s3538_s21, 4  ;;  %s3539_s23 = smov 256   ;;  %s21_s22 = int_to_ptr.vmem [resolvable:$true] %s20_s22 }
   0x3   :  { %s3540_s24 = smov 16  }
   0x4   :  { %26 = dma.hbm_to_vmem [thread:$0]  %s19_s20, 25088, %s21_s22, [#allocation3], %s3539_s23, %s3539_s23, %s3540_s24  }
   0x5   :  { %3534 = dma.done.wait [#allocation3], 25088  }
   0x6   :  { %3535 = vsyncadd [#allocation3], 4294942208  ;;  %v2292_v0 = vld [vmem:[#allocation2 + $0xe0] sm:$0xf]  ;;  %v3252_v1 = vld [vmem:[#allocation2 + $0xec] sm:$0xf0] }
   0x7   :  { %v2420_v2 = vld [vmem:[#allocation2 + $0x1e0] sm:$0xf]  ;;  %v2293_v3 = vor.u32 %v3252_v1, %v2292_v0  ;;  %v3284_v4 = vld [vmem:[#allocation2 + $0x1ec] sm:$0xf0]  ;;  %vm1245_vm0 = vcmask 130048  }
   0x8   :  { %v2548_v5 = vld [vmem:[#allocation2 + $0x2e0] sm:$0xf]  ;;  %v3316_v6 = vld [vmem:[#allocation2 + $0x2ec] sm:$0xf0]  ;;  %v2421_v7 = vor.u32 %v3284_v4, %v2420_v2 }
   0x9   :  { %v2549_v8 = vor.u32 %v3316_v6, %v2548_v5  ;;  %v2676_v9 = vld [vmem:[#allocation2 + $0x3e0] sm:$0xf]  ;;  %v3348_v10 = vld [vmem:[#allocation2 + $0x3ec] sm:$0xf0]  ;;  %1249 = vmatpush.bf16.msra.mxu0 %v2293_v3 }
   0xa   :  { %v2276_v11 = vld [vmem:[#allocation2 + $0xc0] sm:$0xf]  ;;  %v2677_v12 = vor.u32 %v3348_v10, %v2676_v9  ;;  %v3248_v13 = vld [vmem:[#allocation2 + $0xcc] sm:$0xf0]  ;;  %1263 = vmatpush.bf16.msra.mxu1 %v2421_v7 }
   0xb   :  { %v2404_v14 = vld [vmem:[#allocation2 + $0x1c0] sm:$0xf]  ;;  %v3280_v15 = vld [vmem:[#allocation2 + $0x1cc] sm:$0xf0]  ;;  %1277 = vmatpush.bf16.msra.mxu2 %v2549_v8  ;;  %v2277_v16 = vor.u32 %v3248_v13, %v2276_v11 }
   0xc   :  { %v2405_v17 = vor.u32 %v3280_v15, %v2404_v14  ;;  %v2532_v18 = vld [vmem:[#allocation2 + $0x2c0] sm:$0xf]  ;;  %v3312_v19 = vld [vmem:[#allocation2 + $0x2cc] sm:$0xf0]  ;;  %1291 = vmatpush.bf16.msra.mxu3 %v2677_v12 }
   0xd   :  { %v2660_v20 = vld [vmem:[#allocation2 + $0x3c0] sm:$0xf]  ;;  %v2533_v21 = vor.u32 %v3312_v19, %v2532_v18  ;;  %v3344_v22 = vld [vmem:[#allocation2 + $0x3cc] sm:$0xf0]  ;;  %1250 = vmatpush.bf16.msra.mxu0 %v2277_v16 }
   0xe   :  { %v2260_v23 = vld [vmem:[#allocation2 + $0xa0] sm:$0xf]  ;;  %v3244_v24 = vld [vmem:[#allocation2 + $0xac] sm:$0xf0]  ;;  %v2661_v25 = vor.u32 %v3344_v22, %v2660_v20  ;;  %1264 = vmatpush.bf16.msra.mxu1 %v2405_v17 }
   0xf   :  { %v2388_v26 = vld [vmem:[#allocation2 + $0x1a0] sm:$0xf]  ;;  %v3276_v27 = vld [vmem:[#allocation2 + $0x1ac] sm:$0xf0]  ;;  %v2261_v29 = vor.u32 %v3244_v24, %v2260_v23  ;;  %1278 = vmatpush.bf16.msra.mxu2 %v2533_v21 }
  0x10   :  { %v2516_v28 = vld [vmem:[#allocation2 + $0x2a0] sm:$0xf]  ;;  %v3308_v30 = vld [vmem:[#allocation2 + $0x2ac] sm:$0xf0]  ;;  %v2389_v33 = vor.u32 %v3276_v27, %v2388_v26  ;;  %1292 = vmatpush.bf16.msra.mxu3 %v2661_v25 }
  0x11   :  { %v2644_v31 = vld [vmem:[#allocation2 + $0x3a0] sm:$0xf]  ;;  %v3340_v32 = vld [vmem:[#allocation2 + $0x3ac] sm:$0xf0]  ;;  %v2517_v34 = vor.u32 %v3308_v30, %v2516_v28  ;;  %1251 = vmatpush.bf16.msra.mxu0 %v2261_v29 }
  0x12   :  { %v2244_v35 = vld [vmem:[#allocation2 + $0x80] sm:$0xf]  ;;  %v3240_v36 = vld [vmem:[#allocation2 + $0x8c] sm:$0xf0]  ;;  %v2645_v38 = vor.u32 %v3340_v32, %v2644_v31  ;;  %1265 = vmatpush.bf16.msra.mxu1 %v2389_v33  ;;  %v3250_v32 = vld [vmem:[#allocation2 + $0xe4] sm:$0xf] }
  0x13   :  { %v2372_v37 = vld [vmem:[#allocation2 + $0x180] sm:$0xf]  ;;  %v3272_v39 = vld [vmem:[#allocation2 + $0x18c] sm:$0xf0]  ;;  %v2245_v44 = vor.u32 %v3240_v36, %v2244_v35  ;;  %1279 = vmatpush.bf16.msra.mxu2 %v2517_v34  ;;  %v2294_v33 = vld [vmem:[#allocation2 + $0xf0] sm:$0xf0] }
  0x14   :  { %v2500_v40 = vld [vmem:[#allocation2 + $0x280] sm:$0xf]  ;;  %v3304_v41 = vld [vmem:[#allocation2 + $0x28c] sm:$0xf0]  ;;  %v2373_v45 = vor.u32 %v3272_v39, %v2372_v37  ;;  %1293 = vmatpush.bf16.msra.mxu3 %v2645_v38  ;;  %v47_v36 = vld [vmem:[%s4081_s0 + $0x48] sm:$0xff] }
  0x15   :  { %v2628_v42 = vld [vmem:[#allocation2 + $0x380] sm:$0xf]  ;;  %v3336_v43 = vld [vmem:[#allocation2 + $0x38c] sm:$0xf0]  ;;  %v2501_v46 = vor.u32 %v3304_v41, %v2500_v40  ;;  %1252 = vmatpush.bf16.msra.mxu0 %v2245_v44  ;;  %v3282_v41 = vld [vmem:[#allocation2 + $0x1e4] sm:$0xf] }
  0x16   :  { %v2228_v47 = vld [vmem:[#allocation2 + $0x60] sm:$0xf]  ;;  %v3236_v48 = vld [vmem:[#allocation2 + $0x6c] sm:$0xf0]  ;;  %v2629_v50 = vor.u32 %v3336_v43, %v2628_v42  ;;  %1266 = vmatpush.bf16.msra.mxu1 %v2373_v45  ;;  %v45_v43 = vld [vmem:[%s4081_s0 + $0x38] sm:$0xff] }
  0x17   :  { %v2356_v49 = vld [vmem:[#allocation2 + $0x160] sm:$0xf]  ;;  %v3268_v51 = vld [vmem:[#allocation2 + $0x16c] sm:$0xf0]  ;;  %v2229_v56 = vor.u32 %v3236_v48, %v2228_v47  ;;  %1280 = vmatpush.bf16.msra.mxu2 %v2501_v46  ;;  %v2422_v46 = vld [vmem:[#allocation2 + $0x1f0] sm:$0xf0] }
  0x18   :  { %v2484_v52 = vld [vmem:[#allocation2 + $0x260] sm:$0xf]  ;;  %v3300_v53 = vld [vmem:[#allocation2 + $0x26c] sm:$0xf0]  ;;  %v2357_v57 = vor.u32 %v3268_v51, %v2356_v49  ;;  %1294 = vmatpush.bf16.msra.mxu3 %v2629_v50  ;;  %v41_v47 = vld [vmem:[%s4081_s0 + $0x18] sm:$0xff]  ;;  %v2297_v50 = vor.u32 %v3250_v32, %v2294_v33 }
  0x19   :  { %v2612_v54 = vld [vmem:[#allocation2 + $0x360] sm:$0xf]  ;;  %v3332_v55 = vld [vmem:[#allocation2 + $0x36c] sm:$0xf0]  ;;  %v2485_v58 = vor.u32 %v3300_v53, %v2484_v52  ;;  %1253 = vmatpush.bf16.msra.mxu0 %v2229_v56 }
  0x1a   :  { %v2212_v59 = vld [vmem:[#allocation2 + $0x40] sm:$0xf]  ;;  %v3232_v60 = vld [vmem:[#allocation2 + $0x4c] sm:$0xf0]  ;;  %v2613_v62 = vor.u32 %v3332_v55, %v2612_v54  ;;  %1267 = vmatpush.bf16.msra.mxu1 %v2357_v57  ;;  %v3246_v57 = vld [vmem:[#allocation2 + $0xc4] sm:$0xf] }
  0x1b   :  { %v2340_v61 = vld [vmem:[#allocation2 + $0x140] sm:$0xf]  ;;  %v3264_v63 = vld [vmem:[#allocation2 + $0x14c] sm:$0xf0]  ;;  %v2213_v4 = vor.u32 %v3232_v60, %v2212_v59  ;;  %1281 = vmatpush.bf16.msra.mxu2 %v2485_v58  ;;  %v2278_v58 = vld [vmem:[#allocation2 + $0xd0] sm:$0xf0] }
  0x1c   :  { %v2468_v0 = vld [vmem:[#allocation2 + $0x240] sm:$0xf]  ;;  %v3296_v1 = vld [vmem:[#allocation2 + $0x24c] sm:$0xf0]  ;;  %v2341_v6 = vor.u32 %v3264_v63, %v2340_v61  ;;  %1295 = vmatpush.bf16.msra.mxu3 %v2613_v62  ;;  %v39_v61 = vld [vmem:[%s4081_s0 + $0x8] sm:$0xff]  ;;  %v2425_v63 = vor.u32 %v3282_v41, %v2422_v46 }
  0x1d   :  { %v2596_v2 = vld [vmem:[#allocation2 + $0x340] sm:$0xf]  ;;  %v3328_v3 = vld [vmem:[#allocation2 + $0x34c] sm:$0xf0]  ;;  %v2469_v7 = vor.u32 %v3296_v1, %v2468_v0  ;;  %1254 = vmatpush.bf16.msra.mxu0 %v2213_v4  ;;  %v3278_v1 = vld [vmem:[#allocation2 + $0x1c4] sm:$0xf]  ;;  %v2281_v4 = vor.u32 %v3246_v57, %v2278_v58 }
  0x1e   :  { %v2196_v5 = vld [vmem:[#allocation2 + $0x20] sm:$0xf]  ;;  %v3228_v8 = vld [vmem:[#allocation2 + $0x2c] sm:$0xf0]  ;;  %v2597_v11 = vor.u32 %v3328_v3, %v2596_v2  ;;  %1268 = vmatpush.bf16.msra.mxu1 %v2341_v6  ;;  %v2406_v2 = vld [vmem:[#allocation2 + $0x1d0] sm:$0xf0] }
  0x1f   :  { %v2324_v9 = vld [vmem:[#allocation2 + $0x120] sm:$0xf]  ;;  %v3260_v10 = vld [vmem:[#allocation2 + $0x12c] sm:$0xf0]  ;;  %v2197_v18 = vor.u32 %v3228_v8, %v2196_v5  ;;  %1282 = vmatpush.bf16.msra.mxu2 %v2469_v7  ;;  %v2358_v41 = vld [vmem:[#allocation2 + $0x170] sm:$0xf0] }
  0x20   :  { %v2452_v12 = vld [vmem:[#allocation2 + $0x220] sm:$0xf]  ;;  %v3292_v13 = vld [vmem:[#allocation2 + $0x22c] sm:$0xf0]  ;;  %v2325_v23 = vor.u32 %v3260_v10, %v2324_v9  ;;  %1296 = vmatpush.bf16.msra.mxu3 %v2597_v11  ;;  %v3242_v10 = vld [vmem:[#allocation2 + $0xa4] sm:$0xf] }
  0x21   :  { %v2580_v14 = vld [vmem:[#allocation2 + $0x320] sm:$0xf]  ;;  %v3324_v15 = vld [vmem:[#allocation2 + $0x32c] sm:$0xf0]  ;;  %v2453_v24 = vor.u32 %v3292_v13, %v2452_v12  ;;  %1255 = vmatpush.bf16.msra.mxu0 %v2197_v18  ;;  %v2262_v11 = vld [vmem:[#allocation2 + $0xb0] sm:$0xf0]  ;;  %v2409_v12 = vor.u32 %v3278_v1, %v2406_v2 }
  0x22   :  { %v2180_v16 = vld [vmem:[#allocation2] sm:$0xf]  ;;  %v3224_v17 = vld [vmem:[#allocation2 + $0xc] sm:$0xf0]  ;;  %v2581_v28 = vor.u32 %v3324_v15, %v2580_v14  ;;  %1269 = vmatpush.bf16.msra.mxu1 %v2325_v23  ;;  %v3274_v14 = vld [vmem:[#allocation2 + $0x1a4] sm:$0xf] }
  0x23   :  { %v2308_v19 = vld [vmem:[#allocation2 + $0x100] sm:$0xf]  ;;  %v3256_v20 = vld [vmem:[#allocation2 + $0x10c] sm:$0xf0]  ;;  %v2181_v35 = vor.u32 %v3224_v17, %v2180_v16  ;;  %1283 = vmatpush.bf16.msra.mxu2 %v2453_v24  ;;  %v2390_v15 = vld [vmem:[#allocation2 + $0x1b0] sm:$0xf0]  ;;  %v2265_v17 = vor.u32 %v3242_v10, %v2262_v11 }
  0x24   :  { %v2436_v21 = vld [vmem:[#allocation2 + $0x200] sm:$0xf]  ;;  %v3288_v22 = vld [vmem:[#allocation2 + $0x20c] sm:$0xf0]  ;;  %v2309_v39 = vor.u32 %v3256_v20, %v2308_v19  ;;  %1297 = vmatpush.bf16.msra.mxu3 %v2581_v28  ;;  %v2246_v23 = vld [vmem:[#allocation2 + $0x90] sm:$0xf0]  ;;  %v2393_v24 = vor.u32 %v3274_v14, %v2390_v15 }
  0x25   :  { %v2564_v25 = vld [vmem:[#allocation2 + $0x300] sm:$0xf]  ;;  %v3320_v26 = vld [vmem:[#allocation2 + $0x30c] sm:$0xf0]  ;;  %v2437_v40 = vor.u32 %v3288_v22, %v2436_v21  ;;  %1256 = vmatpush.bf16.msra.mxu0 %v2181_v35  ;;  %v3238_v22 = vld [vmem:[#allocation2 + $0x84] sm:$0xf] }
  0x26   :  { %v2804_v27 = vld [vmem:[#allocation2 + $0x4e0] sm:$0xf]  ;;  %v3380_v29 = vld [vmem:[#allocation2 + $0x4ec] sm:$0xf0]  ;;  %v2565_v44 = vor.u32 %v3320_v26, %v2564_v25  ;;  %1270 = vmatpush.bf16.msra.mxu1 %v2309_v39  ;;  %v3270_v26 = vld [vmem:[#allocation2 + $0x184] sm:$0xf] }
  0x27   :  { %v2932_v30 = vld [vmem:[#allocation2 + $0x5e0] sm:$0xf]  ;;  %v3412_v31 = vld [vmem:[#allocation2 + $0x5ec] sm:$0xf0]  ;;  %v2805_v45 = vor.u32 %v3380_v29, %v2804_v27  ;;  %1284 = vmatpush.bf16.msra.mxu2 %v2437_v40  ;;  %v2374_v27 = vld [vmem:[#allocation2 + $0x190] sm:$0xf0]  ;;  %v2249_v29 = vor.u32 %v3238_v22, %v2246_v23 }
  0x28   :  { %v40_v34 = vld [vmem:[%s4081_s0 + $0x10] sm:$0xff]  ;;  %v2948_v37 = vld [vmem:[#allocation2 + $0x600] sm:$0xf]  ;;  %v2933_v49 = vor.u32 %v3412_v31, %v2932_v30  ;;  %1298 = vmatpush.bf16.msra.mxu3 %v2565_v44  ;;  %v3266_v40 = vld [vmem:[#allocation2 + $0x164] sm:$0xf] }
  0x29   :  { %v3416_v38 = vld [vmem:[#allocation2 + $0x60c] sm:$0xf0]  ;;  %v38_v42 = vld [vmem:[%s4081_s0] sm:$0xff]  ;;  %v3596_v54 = vpack.c.bf16 %v47_v36, %v40_v34  ;;  %1305 = vmatpush.bf16.msrb.mxu0 %v2805_v45  ;;  %v2230_v35 = vld [vmem:[#allocation2 + $0x70] sm:$0xf0] }
  0x2a   :  { %v48_v48 = vld [vmem:[%s4081_s0 + $0x50] sm:$0xff]  ;;  %v2788_v51 = vld [vmem:[#allocation2 + $0x4c0] sm:$0xf]  ;;  %v3598_v55 = vpack.c.bf16 %v45_v43, %v38_v42  ;;  %v2949_v59 = vor.u32 %v3416_v38, %v2948_v37  ;;  %1319 = vmatpush.bf16.msrb.mxu1 %v2933_v49  ;;  %v3234_v34 = vld [vmem:[#allocation2 + $0x64] sm:$0xf]  ;;  %v2377_v38 = vor.u32 %v3270_v26, %v2374_v27 }
  0x2b   :  { %v3376_v52 = vld [vmem:[#allocation2 + $0x4cc] sm:$0xf0]  ;;  %v2916_v53 = vld [vmem:[#allocation2 + $0x5c0] sm:$0xf]  ;;  %v3600_v60 = vpack.c.bf16 %v48_v48, %v41_v47  ;;  %1285 = vmatmul.bf16.vlgmr.msra.gmra.mxu2 %v3596_v54  ;;  %v51_v37 = vld [vmem:[%s4081_s0 + $0x68] sm:$0xff]  ;;  %v2233_v43 = vor.u32 %v3234_v34, %v2230_v35 }
  0x2c   :  { %v3408_v56 = vld [vmem:[#allocation2 + $0x5cc] sm:$0xf0]  ;;  %v46_v62 = vld [vmem:[%s4081_s0 + $0x40] sm:$0xff]  ;;  %v2789_v0 = vor.u32 %v3376_v52, %v2788_v51  ;;  %1347 = vmatpush.bf16.msrb.mxu3 %v2297_v50  ;;  %1257 = vmatmul.bf16.vlgmr.msra.gmra.mxu0 %v3598_v55  ;;  %v2214_v49 = vld [vmem:[#allocation2 + $0x50] sm:$0xf0]  ;;  %v2361_v51 = vor.u32 %v3266_v40, %v2358_v41 }
  0x2d   :  { %v2917_v3 = vor.u32 %v3408_v56, %v2916_v53  ;;  %v2772_v5 = vld [vmem:[#allocation2 + $0x4a0] sm:$0xf]  ;;  %v3372_v6 = vld [vmem:[#allocation2 + $0x4ac] sm:$0xf0]  ;;  %v3610_v8 = vpack.c.bf16 %v46_v62, %v39_v61  ;;  %1340 = vmatpush.bf16.msrb.mxu2 %v2949_v59  ;;  %1299 = vmatmul.bf16.vlgmr.msra.gmra.mxu3 %v3600_v60  ;;  %v3230_v48 = vld [vmem:[#allocation2 + $0x44] sm:$0xf] }
  0x2e   :  { %v2900_v7 = vld [vmem:[#allocation2 + $0x5a0] sm:$0xf]  ;;  %v3404_v9 = vld [vmem:[#allocation2 + $0x5ac] sm:$0xf0]  ;;  %1306 = vmatpush.bf16.msrb.mxu0 %v2789_v0  ;;  %v2773_v13 = vor.u32 %v3372_v6, %v2772_v5  ;;  %v3262_v53 = vld [vmem:[#allocation2 + $0x144] sm:$0xf]  ;;  %v2217_v58 = vor.u32 %v3230_v48, %v2214_v49 }
  0x2f   :  { %1320 = vmatpush.bf16.msrb.mxu1 %v2917_v3  ;;  %v2901_v16 = vor.u32 %v3404_v9, %v2900_v7  ;;  %v2756_v18 = vld [vmem:[#allocation2 + $0x480] sm:$0xf]  ;;  %v3368_v19 = vld [vmem:[#allocation2 + $0x48c] sm:$0xf0]  ;;  %v2342_v56 = vld [vmem:[#allocation2 + $0x150] sm:$0xf0] }
  0x30   :  { %1348 = vmatpush.bf16.msrb.mxu3 %v2281_v4  ;;  %v2884_v20 = vld [vmem:[#allocation2 + $0x580] sm:$0xf]  ;;  %1271 = vmatmul.bf16.vlgmr.msra.gmra.mxu1 %v3610_v8  ;;  %v3400_v21 = vld [vmem:[#allocation2 + $0x58c] sm:$0xf0]  ;;  %v2757_v25 = vor.u32 %v3368_v19, %v2756_v18  ;;  %v3226_v0 = vld [vmem:[#allocation2 + $0x24] sm:$0xf]  ;;  %v2345_v4 = vor.u32 %v3262_v53, %v2342_v56 }
  0x31   :  { %1361 = vmatpush.bf16.msra.mxu2 %v2425_v63  ;;  %v2885_v28 = vor.u32 %v3400_v21, %v2884_v20  ;;  %v2740_v30 = vld [vmem:[#allocation2 + $0x460] sm:$0xf]  ;;  %v3364_v31 = vld [vmem:[#allocation2 + $0x46c] sm:$0xf0]  ;;  %v2198_v1 = vld [vmem:[#allocation2 + $0x30] sm:$0xf0] }
  0x32   :  { %1307 = vmatpush.bf16.msrb.mxu0 %v2773_v13  ;;  %v2868_v32 = vld [vmem:[#allocation2 + $0x560] sm:$0xf]  ;;  %v3396_v33 = vld [vmem:[#allocation2 + $0x56c] sm:$0xf0]  ;;  %v2741_v39 = vor.u32 %v3364_v31, %v2740_v30  ;;  %v3258_v2 = vld [vmem:[#allocation2 + $0x124] sm:$0xf]  ;;  %v2201_v11 = vor.u32 %v3226_v0, %v2198_v1 }
  0x33   :  { %1321 = vmatpush.bf16.msrb.mxu1 %v2901_v16  ;;  %v44_v36 = vld [vmem:[%s4081_s0 + $0x30] sm:$0xff]  ;;  %v2869_v42 = vor.u32 %v3396_v33, %v2868_v32  ;;  %v2724_v44 = vld [vmem:[#allocation2 + $0x440] sm:$0xf]  ;;  %v3222_v13 = vld [vmem:[#allocation2 + $0x4] sm:$0xf] }
  0x34   :  { %1349 = vmatpush.bf16.msrb.mxu3 %v2265_v17  ;;  %v3360_v45 = vld [vmem:[#allocation2 + $0x44c] sm:$0xf0]  ;;  %v2852_v46 = vld [vmem:[#allocation2 + $0x540] sm:$0xf]  ;;  %v3620_v50 = vpack.c.bf16 %v51_v37, %v44_v36  ;;  %v2326_v3 = vld [vmem:[#allocation2 + $0x130] sm:$0xf0] }
  0x35   :  { %1362 = vmatpush.bf16.msra.mxu2 %v2409_v12  ;;  %v3392_v47 = vld [vmem:[#allocation2 + $0x54c] sm:$0xf0]  ;;  %v2725_v52 = vor.u32 %v3360_v45, %v2724_v44  ;;  %v2708_v59 = vld [vmem:[#allocation2 + $0x420] sm:$0xf]  ;;  %v2182_v14 = vld [vmem:[#allocation2 + $0x10] sm:$0xf0]  ;;  %v2329_v21 = vor.u32 %v3258_v2, %v2326_v3 }
  0x36   :  { %1308 = vmatpush.bf16.msrb.mxu0 %v2757_v25  ;;  %v2853_v57 = vor.u32 %v3392_v47, %v2852_v46  ;;  %v3356_v61 = vld [vmem:[#allocation2 + $0x42c] sm:$0xf0]  ;;  %v2836_v62 = vld [vmem:[#allocation2 + $0x520] sm:$0xf]  ;;  %v3314_v15 = vld [vmem:[#allocation2 + $0x2e4] sm:$0xf]  ;;  %v2185_v27 = vor.u32 %v3222_v13, %v2182_v14 }
  0x37   :  { %1322 = vmatpush.bf16.msrb.mxu1 %v2885_v28  ;;  %v3388_v63 = vld [vmem:[#allocation2 + $0x52c] sm:$0xf0]  ;;  %v2709_v5 = vor.u32 %v3356_v61, %v2708_v59  ;;  %v2692_v6 = vld [vmem:[#allocation2 + $0x400] sm:$0xf]  ;;  %v2550_v16 = vld [vmem:[#allocation2 + $0x2f0] sm:$0xf0] }
  0x38   :  { %1350 = vmatpush.bf16.msrb.mxu3 %v2249_v29  ;;  %v3352_v7 = vld [vmem:[#allocation2 + $0x40c] sm:$0xf0]  ;;  %v2820_v9 = vld [vmem:[#allocation2 + $0x500] sm:$0xf]  ;;  %v2837_v10 = vor.u32 %v3388_v63, %v2836_v62  ;;  %v3346_v17 = vld [vmem:[#allocation2 + $0x3e4] sm:$0xf]  ;;  %v2553_v31 = vor.u32 %v3314_v15, %v2550_v16 }
  0x39   :  { %1363 = vmatpush.bf16.msra.mxu2 %v2393_v24  ;;  %v3384_v12 = vld [vmem:[#allocation2 + $0x50c] sm:$0xf0]  ;;  %v2678_v18 = vld [vmem:[#allocation2 + $0x3f0] sm:$0xf0]  ;;  %v3378_v19 = vld [vmem:[#allocation2 + $0x4e4] sm:$0xf]  ;;  %v2693_v22 = vor.u32 %v3352_v7, %v2692_v6 }
  0x3a   :  { %1309 = vmatpush.bf16.msrb.mxu0 %v2741_v39  ;;  %v2806_v20 = vld [vmem:[#allocation2 + $0x4f0] sm:$0xf0]  ;;  %v42_v23 = vld [vmem:[%s4081_s0 + $0x20] sm:$0xff]  ;;  %v49_v24 = vld [vmem:[%s4081_s0 + $0x58] sm:$0xff]  ;;  %v2821_v26 = vor.u32 %v3384_v12, %v2820_v9  ;;  %v2681_v32 = vor.u32 %v3346_v17, %v2678_v18 }
  0x3b   :  { %1323 = vmatpush.bf16.msrb.mxu1 %v2869_v42  ;;  %2962 = vmatmul.msk.bf16.vlgmr.msrb.gmra.mxu2 %vm1245_vm0, %v3620_v50  ;;  %v3254_v25 = vld [vmem:[#allocation2 + $0x104] sm:$0xf]  ;;  %v2310_v28 = vld [vmem:[#allocation2 + $0x110] sm:$0xf0]  ;;  %v43_v29 = vld [vmem:[%s4081_s0 + $0x28] sm:$0xff]  ;;  %v2809_v36 = vor.u32 %v3378_v19, %v2806_v20  ;;  %v3636_v37 = vpack.c.bf16 %v49_v24, %v42_v23 }
  0x3c   :  { %1351 = vmatpush.bf16.msrb.mxu3 %v2233_v43  ;;  %v50_v30 = vld [vmem:[%s4081_s0 + $0x60] sm:$0xff]  ;;  %v2934_v34 = vld [vmem:[#allocation2 + $0x5f0] sm:$0xf0]  ;;  %v2313_v41 = vor.u32 %v3254_v25, %v2310_v28 }
  0x3d   :  { %1364 = vmatpush.bf16.msra.mxu2 %v2377_v38  ;;  %v3410_v33 = vld [vmem:[#allocation2 + $0x5e4] sm:$0xf]  ;;  %v2534_v38 = vld [vmem:[#allocation2 + $0x2d0] sm:$0xf0]  ;;  %v3638_v42 = vpack.c.bf16 %v50_v30, %v43_v29 }
  0x3e   :  { %1310 = vmatpush.bf16.msrb.mxu0 %v2725_v52  ;;  %v3310_v35 = vld [vmem:[#allocation2 + $0x2c4] sm:$0xf]  ;;  %v2662_v40 = vld [vmem:[#allocation2 + $0x3d0] sm:$0xf0]  ;;  %v2937_v45 = vor.u32 %v3410_v33, %v2934_v34 }
  0x3f   :  { %1324 = vmatpush.bf16.msrb.mxu1 %v2853_v57  ;;  %v3342_v39 = vld [vmem:[#allocation2 + $0x3c4] sm:$0xf]  ;;  %v2790_v44 = vld [vmem:[#allocation2 + $0x4d0] sm:$0xf0]  ;;  %v2537_v46 = vor.u32 %v3310_v35, %v2534_v38 }
  0x40   :  { %1352 = vmatpush.bf16.msrb.mxu3 %v2217_v58  ;;  %v3374_v43 = vld [vmem:[#allocation2 + $0x4c4] sm:$0xf]  ;;  %v2665_v47 = vor.u32 %v3342_v39, %v2662_v40  ;;  %v2918_v49 = vld [vmem:[#allocation2 + $0x5d0] sm:$0xf0] }
  0x41   :  { %1365 = vmatpush.bf16.msra.mxu2 %v2361_v51  ;;  %v3406_v48 = vld [vmem:[#allocation2 + $0x5c4] sm:$0xf]  ;;  %v2793_v52 = vor.u32 %v3374_v43, %v2790_v44  ;;  %v2518_v53 = vld [vmem:[#allocation2 + $0x2b0] sm:$0xf0] }
  0x42   :  { %1311 = vmatpush.bf16.msrb.mxu0 %v2709_v5  ;;  %v3306_v51 = vld [vmem:[#allocation2 + $0x2a4] sm:$0xf]  ;;  %v2646_v57 = vld [vmem:[#allocation2 + $0x3b0] sm:$0xf0]  ;;  %v2921_v61 = vor.u32 %v3406_v48, %v2918_v49 }
  0x43   :  { %1325 = vmatpush.bf16.msrb.mxu1 %v2837_v10  ;;  %v3338_v56 = vld [vmem:[#allocation2 + $0x3a4] sm:$0xf]  ;;  %v2774_v59 = vld [vmem:[#allocation2 + $0x4b0] sm:$0xf0]  ;;  %v2521_v62 = vor.u32 %v3306_v51, %v2518_v53 }
  0x44   :  { %1353 = vmatpush.bf16.msrb.mxu3 %v2201_v11  ;;  %v3370_v58 = vld [vmem:[#allocation2 + $0x4a4] sm:$0xf]  ;;  %v2649_v63 = vor.u32 %v3338_v56, %v2646_v57  ;;  %v2902_v1 = vld [vmem:[#allocation2 + $0x5b0] sm:$0xf0] }
  0x45   :  { %1366 = vmatpush.bf16.msra.mxu2 %v2345_v4  ;;  %v3402_v0 = vld [vmem:[#allocation2 + $0x5a4] sm:$0xf]  ;;  %v2777_v3 = vor.u32 %v3370_v58, %v2774_v59  ;;  %v2502_v4 = vld [vmem:[#allocation2 + $0x290] sm:$0xf0] }
  0x46   :  { %1312 = vmatpush.bf16.msrb.mxu0 %v2693_v22  ;;  %v3302_v2 = vld [vmem:[#allocation2 + $0x284] sm:$0xf]  ;;  %v2630_v6 = vld [vmem:[#allocation2 + $0x390] sm:$0xf0]  ;;  %v2905_v10 = vor.u32 %v3402_v0, %v2902_v1  ;;  %v2300_v0 = vld [vmem:[#allocation2 + $0xe8] sm:$0xf] }
  0x47   :  { %1326 = vmatpush.bf16.msrb.mxu1 %v2821_v26  ;;  %v3334_v5 = vld [vmem:[#allocation2 + $0x384] sm:$0xf]  ;;  %v2758_v9 = vld [vmem:[#allocation2 + $0x490] sm:$0xf0]  ;;  %v2505_v11 = vor.u32 %v3302_v2, %v2502_v4  ;;  %v3253_v1 = vld [vmem:[#allocation2 + $0xf4] sm:$0xf0] }
  0x48   :  { %1354 = vmatpush.bf16.msrb.mxu3 %v2185_v27  ;;  %v3366_v7 = vld [vmem:[#allocation2 + $0x484] sm:$0xf]  ;;  %v2633_v12 = vor.u32 %v3334_v5, %v2630_v6  ;;  %v2886_v14 = vld [vmem:[#allocation2 + $0x590] sm:$0xf0]  ;;  %v2556_v5 = vld [vmem:[#allocation2 + $0x2e8] sm:$0xf] }
  0x49   :  { %1367 = vmatpush.bf16.msra.mxu2 %v2329_v21  ;;  %1313 = vmatmul.bf16.vlgmr.msrb.gmra.mxu0 %v3636_v37  ;;  %v3398_v13 = vld [vmem:[#allocation2 + $0x584] sm:$0xf]  ;;  %v2761_v16 = vor.u32 %v3366_v7, %v2758_v9  ;;  %v2486_v17 = vld [vmem:[#allocation2 + $0x270] sm:$0xf0]  ;;  %v3317_v6 = vld [vmem:[#allocation2 + $0x2f4] sm:$0xf0] }
  0x4a   :  { %1375 = vmatpush.bf16.msra.mxu0 %v2553_v31  ;;  %1327 = vmatmul.bf16.vlgmr.msrb.gmra.mxu1 %v3638_v42  ;;  %v3298_v15 = vld [vmem:[#allocation2 + $0x264] sm:$0xf]  ;;  %v2614_v19 = vld [vmem:[#allocation2 + $0x370] sm:$0xf0]  ;;  %v2889_v22 = vor.u32 %v3398_v13, %v2886_v14  ;;  %v2301_v13 = vor.u32 %v3253_v1, %v2300_v0  ;;  %v2684_v14 = vld [vmem:[#allocation2 + $0x3e8] sm:$0xf] }
  0x4b   :  { %1389 = vmatpush.bf16.msra.mxu1 %v2681_v32  ;;  %1355 = vmatmul.bf16.vlgmr.msrb.gmra.mxu3 %v3598_v55  ;;  %v3330_v18 = vld [vmem:[#allocation2 + $0x364] sm:$0xf]  ;;  %v2742_v21 = vld [vmem:[#allocation2 + $0x470] sm:$0xf0]  ;;  %v2489_v23 = vor.u32 %v3298_v15, %v2486_v17  ;;  %v3349_v15 = vld [vmem:[#allocation2 + $0x3f4] sm:$0xf0] }
  0x4c   :  { %1403 = vmatpush.bf16.msra.mxu3 %v2809_v36  ;;  %v3362_v20 = vld [vmem:[#allocation2 + $0x464] sm:$0xf]  ;;  %v2617_v24 = vor.u32 %v3330_v18, %v2614_v19  ;;  %v2870_v26 = vld [vmem:[#allocation2 + $0x570] sm:$0xf0]  ;;  %v2428_v17 = vld [vmem:[#allocation2 + $0x1e8] sm:$0xf]  ;;  %v2557_v19 = vor.u32 %v3317_v6, %v2556_v5 }
  0x4d   :  { %1368 = vmatpush.bf16.msra.mxu2 %v2313_v41  ;;  %v3394_v25 = vld [vmem:[#allocation2 + $0x564] sm:$0xf]  ;;  %v2745_v28 = vor.u32 %v3362_v20, %v2742_v21  ;;  %v2470_v29 = vld [vmem:[#allocation2 + $0x250] sm:$0xf0]  ;;  %v3285_v18 = vld [vmem:[#allocation2 + $0x1f4] sm:$0xf0] }
  0x4e   :  { %1376 = vmatpush.bf16.msra.mxu0 %v2537_v46  ;;  %v3294_v27 = vld [vmem:[#allocation2 + $0x244] sm:$0xf]  ;;  %v2598_v31 = vld [vmem:[#allocation2 + $0x350] sm:$0xf0]  ;;  %v2873_v34 = vor.u32 %v3394_v25, %v2870_v26  ;;  %v2284_v21 = vld [vmem:[#allocation2 + $0xc8] sm:$0xf]  ;;  %v2429_v26 = vor.u32 %v3285_v18, %v2428_v17 }
  0x4f   :  { %1390 = vmatpush.bf16.msra.mxu1 %v2665_v47  ;;  %v3326_v30 = vld [vmem:[#allocation2 + $0x344] sm:$0xf]  ;;  %v2726_v33 = vld [vmem:[#allocation2 + $0x450] sm:$0xf0]  ;;  %v2473_v35 = vor.u32 %v3294_v27, %v2470_v29  ;;  %v3313_v25 = vld [vmem:[#allocation2 + $0x2d4] sm:$0xf0] }
  0x50   :  { %1404 = vmatpush.bf16.msra.mxu3 %v2793_v52  ;;  %1369 = vmatmul.bf16.vlgmr.msra.gmra.mxu2 %v3610_v8  ;;  %v3358_v32 = vld [vmem:[#allocation2 + $0x444] sm:$0xf]  ;;  %v2601_v36 = vor.u32 %v3326_v30, %v2598_v31  ;;  %v2854_v39 = vld [vmem:[#allocation2 + $0x550] sm:$0xf0]  ;;  %v2668_v27 = vld [vmem:[#allocation2 + $0x3c8] sm:$0xf] }
  0x51   :  { %1417 = vmatpush.bf16.msrb.mxu2 %v2937_v45  ;;  %v3390_v38 = vld [vmem:[#allocation2 + $0x544] sm:$0xf]  ;;  %v2729_v41 = vor.u32 %v3358_v32, %v2726_v33  ;;  %v2454_v43 = vld [vmem:[#allocation2 + $0x230] sm:$0xf0]  ;;  %v2412_v30 = vld [vmem:[#allocation2 + $0x1c8] sm:$0xf] }
  0x52   :  { %1377 = vmatpush.bf16.msra.mxu0 %v2521_v62  ;;  %v3290_v40 = vld [vmem:[#allocation2 + $0x224] sm:$0xf]  ;;  %v2582_v45 = vld [vmem:[#allocation2 + $0x330] sm:$0xf0]  ;;  %v2857_v48 = vor.u32 %v3390_v38, %v2854_v39  ;;  %v3281_v31 = vld [vmem:[#allocation2 + $0x1d4] sm:$0xf0] }
  0x53   :  { %1391 = vmatpush.bf16.msra.mxu1 %v2649_v63  ;;  %v3322_v44 = vld [vmem:[#allocation2 + $0x324] sm:$0xf]  ;;  %v2710_v47 = vld [vmem:[#allocation2 + $0x430] sm:$0xf0]  ;;  %v2457_v52 = vor.u32 %v3290_v40, %v2454_v43  ;;  %v2268_v33 = vld [vmem:[#allocation2 + $0xa8] sm:$0xf]  ;;  %v2413_v39 = vor.u32 %v3281_v31, %v2412_v30 }
  0x54   :  { %1405 = vmatpush.bf16.msra.mxu3 %v2777_v3  ;;  %v3354_v46 = vld [vmem:[#allocation2 + $0x424] sm:$0xf]  ;;  %v2838_v51 = vld [vmem:[#allocation2 + $0x530] sm:$0xf0]  ;;  %v2585_v53 = vor.u32 %v3322_v44, %v2582_v45  ;;  %v3309_v38 = vld [vmem:[#allocation2 + $0x2b4] sm:$0xf0] }
  0x55   :  { %1418 = vmatpush.bf16.msrb.mxu2 %v2921_v61  ;;  %v3386_v49 = vld [vmem:[#allocation2 + $0x524] sm:$0xf]  ;;  %v2438_v57 = vld [vmem:[#allocation2 + $0x210] sm:$0xf0]  ;;  %v2713_v59 = vor.u32 %v3354_v46, %v2710_v47  ;;  %v2652_v40 = vld [vmem:[#allocation2 + $0x3a8] sm:$0xf] }
  0x56   :  { %1378 = vmatpush.bf16.msra.mxu0 %v2505_v11  ;;  %v3286_v56 = vld [vmem:[#allocation2 + $0x204] sm:$0xf]  ;;  %v2566_v61 = vld [vmem:[#allocation2 + $0x310] sm:$0xf0]  ;;  %v2841_v3 = vor.u32 %v3386_v49, %v2838_v51  ;;  %v2396_v44 = vld [vmem:[#allocation2 + $0x1a8] sm:$0xf] }
  0x57   :  { %1392 = vmatpush.bf16.msra.mxu1 %v2633_v12  ;;  %v3318_v58 = vld [vmem:[#allocation2 + $0x304] sm:$0xf]  ;;  %v2694_v63 = vld [vmem:[#allocation2 + $0x410] sm:$0xf0]  ;;  %v2441_v7 = vor.u32 %v3286_v56, %v2438_v57  ;;  %v3277_v45 = vld [vmem:[#allocation2 + $0x1b4] sm:$0xf0] }
  0x58   :  { %1406 = vmatpush.bf16.msra.mxu3 %v2761_v16  ;;  %v3350_v62 = vld [vmem:[#allocation2 + $0x404] sm:$0xf]  ;;  %v2950_v4 = vld [vmem:[#allocation2 + $0x610] sm:$0xf0]  ;;  %v2569_v9 = vor.u32 %v3318_v58, %v2566_v61  ;;  %v2252_v47 = vld [vmem:[#allocation2 + $0x88] sm:$0xf] }
  0x59   :  { %1419 = vmatpush.bf16.msrb.mxu2 %v2905_v10  ;;  %v3414_v2 = vld [vmem:[#allocation2 + $0x604] sm:$0xf]  ;;  %v2822_v11 = vld [vmem:[#allocation2 + $0x510] sm:$0xf0]  ;;  %v2697_v12 = vor.u32 %v3350_v62, %v2694_v63  ;;  %v2508_v51 = vld [vmem:[#allocation2 + $0x288] sm:$0xf] }
  0x5a   :  { %1379 = vmatpush.bf16.msra.mxu0 %v2489_v23  ;;  %v3382_v10 = vld [vmem:[#allocation2 + $0x504] sm:$0xf]  ;;  %v2953_v16 = vor.u32 %v3414_v2, %v2950_v4  ;;  %v2685_v23 = vor.u32 %v3349_v15, %v2684_v14  ;;  %v2636_v56 = vld [vmem:[#allocation2 + $0x388] sm:$0xf]  ;;  %v3337_v57 = vld [vmem:[#allocation2 + $0x394] sm:$0xf0] }
  0x5b   :  { %1393 = vmatpush.bf16.msra.mxu1 %v2617_v24  ;;  %v2825_v20 = vor.u32 %v3382_v10, %v2822_v11  ;;  %v2540_v24 = vld [vmem:[#allocation2 + $0x2c8] sm:$0xf]  ;;  %v3273_v61 = vld [vmem:[#allocation2 + $0x194] sm:$0xf0]  ;;  %v2637_v1 = vor.u32 %v3337_v57, %v2636_v56  ;;  %v3251_v56 = vld [vmem:[#allocation2 + $0xec] sm:$0xf] }
  0x5c   :  { %1407 = vmatpush.bf16.msra.mxu3 %v2745_v28  ;;  %v3345_v28 = vld [vmem:[#allocation2 + $0x3d4] sm:$0xf0]  ;;  %v2541_v32 = vor.u32 %v3313_v25, %v2540_v24  ;;  %v2236_v63 = vld [vmem:[#allocation2 + $0x68] sm:$0xf]  ;;  %v2302_v57 = vld [vmem:[#allocation2 + $0xf8] sm:$0xf0] }
  0x5d   :  { %1420 = vmatpush.bf16.msrb.mxu2 %v2889_v22  ;;  %v3249_v22 = vld [vmem:[#allocation2 + $0xd4] sm:$0xf0]  ;;  %v2492_v2 = vld [vmem:[#allocation2 + $0x268] sm:$0xf] }
  0x5e   :  { %1380 = vmatpush.bf16.msra.mxu0 %v2473_v35  ;;  %v2285_v29 = vor.u32 %v3249_v22, %v2284_v21  ;;  %v2669_v35 = vor.u32 %v3345_v28, %v2668_v27  ;;  %v3237_v0 = vld [vmem:[#allocation2 + $0x74] sm:$0xf0]  ;;  %v2620_v5 = vld [vmem:[#allocation2 + $0x368] sm:$0xf] }
  0x5f   :  { %1394 = vmatpush.bf16.msra.mxu1 %v2601_v36  ;;  %v2524_v36 = vld [vmem:[#allocation2 + $0x2a8] sm:$0xf]  ;;  %v3333_v6 = vld [vmem:[#allocation2 + $0x374] sm:$0xf0] }
  0x60   :  { %1408 = vmatpush.bf16.msra.mxu3 %v2729_v41  ;;  %v3341_v41 = vld [vmem:[#allocation2 + $0x3b4] sm:$0xf0]  ;;  %v2525_v46 = vor.u32 %v3309_v38, %v2524_v36  ;;  %v2621_v14 = vor.u32 %v3333_v6, %v2620_v5  ;;  %v2476_v15 = vld [vmem:[#allocation2 + $0x248] sm:$0xf]  ;;  %v2305_v6 = vor.u32 %v3251_v56, %v2302_v57 }
  0x61   :  { %1421 = vmatpush.bf16.msrb.mxu2 %v2873_v34  ;;  %v3245_v34 = vld [vmem:[#allocation2 + $0xb4] sm:$0xf0]  ;;  %v2653_v49 = vor.u32 %v3341_v41, %v2652_v40  ;;  %v2604_v18 = vld [vmem:[#allocation2 + $0x348] sm:$0xf] }
  0x62   :  { %1381 = vmatpush.bf16.msra.mxu0 %v2457_v52  ;;  %v2269_v43 = vor.u32 %v3245_v34, %v2268_v33  ;;  %v3305_v52 = vld [vmem:[#allocation2 + $0x294] sm:$0xf0]  ;;  %v2348_v21 = vld [vmem:[#allocation2 + $0x148] sm:$0xf] }
  0x63   :  { %1395 = vmatpush.bf16.msra.mxu1 %v2585_v53  ;;  %v2397_v53 = vor.u32 %v3277_v45, %v2396_v44  ;;  %v2509_v62 = vor.u32 %v3305_v52, %v2508_v51  ;;  %v3269_v10 = vld [vmem:[#allocation2 + $0x174] sm:$0xf0]  ;;  %v2204_v24 = vld [vmem:[#allocation2 + $0x28] sm:$0xf] }
  0x64   :  { %1409 = vmatpush.bf16.msra.mxu3 %v2713_v59  ;;  %v2380_v59 = vld [vmem:[#allocation2 + $0x188] sm:$0xf]  ;;  %v3265_v22 = vld [vmem:[#allocation2 + $0x154] sm:$0xf0] }
  0x65   :  { %1422 = vmatpush.bf16.msrb.mxu2 %v2857_v48  ;;  %v3241_v48 = vld [vmem:[#allocation2 + $0x94] sm:$0xf0]  ;;  %v2381_v4 = vor.u32 %v3273_v61, %v2380_v59  ;;  %v2460_v27 = vld [vmem:[#allocation2 + $0x228] sm:$0xf] }
  0x66   :  { %1382 = vmatpush.bf16.msra.mxu0 %v2441_v7  ;;  %v2253_v58 = vor.u32 %v3241_v48, %v2252_v47  ;;  %v2237_v7 = vor.u32 %v3237_v0, %v2236_v63  ;;  %v3229_v25 = vld [vmem:[#allocation2 + $0x34] sm:$0xf0]  ;;  %v2588_v30 = vld [vmem:[#allocation2 + $0x328] sm:$0xf] }
  0x67   :  { %1396 = vmatpush.bf16.msra.mxu1 %v2569_v9  ;;  %v2364_v9 = vld [vmem:[#allocation2 + $0x168] sm:$0xf]  ;;  %v3293_v28 = vld [vmem:[#allocation2 + $0x234] sm:$0xf0] }
  0x68   :  { %1410 = vmatpush.bf16.msra.mxu3 %v2697_v12  ;;  %v2220_v12 = vld [vmem:[#allocation2 + $0x48] sm:$0xf]  ;;  %v2365_v17 = vor.u32 %v3269_v10, %v2364_v9  ;;  %v3325_v31 = vld [vmem:[#allocation2 + $0x334] sm:$0xf0]  ;;  %v2461_v36 = vor.u32 %v3293_v28, %v2460_v27  ;;  %v3247_v9 = vld [vmem:[#allocation2 + $0xcc] sm:$0xf] }
  0x69   :  { %1423 = vmatpush.bf16.msrb.mxu2 %v2841_v3  ;;  %1383 = vmatmul.bf16.vlgmr.msra.gmra.mxu0 %v3596_v54  ;;  %v3301_v3 = vld [vmem:[#allocation2 + $0x274] sm:$0xf0]  ;;  %v2332_v33 = vld [vmem:[#allocation2 + $0x128] sm:$0xf]  ;;  %v2589_v41 = vor.u32 %v3325_v31, %v2588_v30  ;;  %v2286_v10 = vld [vmem:[#allocation2 + $0xd8] sm:$0xf0] }
  0x6a   :  { %1473 = vmatpush.bf16.msrb.mxu0 %v2557_v19  ;;  %1397 = vmatmul.bf16.vlgmr.msra.gmra.mxu1 %v3600_v60  ;;  %v2493_v11 = vor.u32 %v3301_v3, %v2492_v2  ;;  %v3329_v19 = vld [vmem:[#allocation2 + $0x354] sm:$0xf0]  ;;  %v2444_v44 = vld [vmem:[#allocation2 + $0x208] sm:$0xf]  ;;  %v3283_v3 = vld [vmem:[#allocation2 + $0x1ec] sm:$0xf] }
  0x6b   :  { %1445 = vmatpush.bf16.msrb.mxu1 %v2301_v13  ;;  %1411 = vmatmul.bf16.vlgmr.msra.gmra.mxu3 %v3636_v37  ;;  %v3233_v13 = vld [vmem:[#allocation2 + $0x54] sm:$0xf0]  ;;  %v2940_v61 = vld [vmem:[#allocation2 + $0x5e8] sm:$0xf]  ;;  %v2398_v30 = vld [vmem:[#allocation2 + $0x1b8] sm:$0xf0] }
  0x6c   :  { %1438 = vmatpush.bf16.msrb.mxu3 %v2953_v16  ;;  %v3297_v16 = vld [vmem:[#allocation2 + $0x254] sm:$0xf0]  ;;  %v2796_v63 = vld [vmem:[#allocation2 + $0x4c8] sm:$0xf] }
  0x6d   :  { %1424 = vmatpush.bf16.msrb.mxu2 %v2825_v20  ;;  %v2221_v20 = vor.u32 %v3233_v13, %v2220_v12  ;;  %v3261_v34 = vld [vmem:[#allocation2 + $0x134] sm:$0xf0]  ;;  %v2924_v13 = vld [vmem:[#allocation2 + $0x5c8] sm:$0xf] }
  0x6e   :  { %1474 = vmatpush.bf16.msrb.mxu0 %v2541_v32  ;;  %v2205_v32 = vor.u32 %v3229_v25, %v2204_v24  ;;  %v3225_v38 = vld [vmem:[#allocation2 + $0x14] sm:$0xf0]  ;;  %v2333_v47 = vor.u32 %v3261_v34, %v2332_v33  ;;  %v2908_v25 = vld [vmem:[#allocation2 + $0x5a8] sm:$0xf]  ;;  %v3239_v33 = vld [vmem:[#allocation2 + $0x8c] sm:$0xf] }
  0x6f   :  { %1446 = vmatpush.bf16.msrb.mxu1 %v2285_v29  ;;  %v2349_v29 = vor.u32 %v3265_v22, %v2348_v21  ;;  %v3381_v40 = vld [vmem:[#allocation2 + $0x4f4] sm:$0xf0]  ;;  %v3243_v21 = vld [vmem:[#allocation2 + $0xac] sm:$0xf]  ;;  %v2270_v22 = vld [vmem:[#allocation2 + $0xb8] sm:$0xf0] }
  0x70   :  { %1459 = vmatpush.bf16.msra.mxu3 %v2429_v26  ;;  %1425 = vmatmul.bf16.vlgmr.msrb.gmra.mxu2 %v3638_v42  ;;  %v2605_v26 = vor.u32 %v3329_v19, %v2604_v18  ;;  %v3289_v45 = vld [vmem:[#allocation2 + $0x214] sm:$0xf0]  ;;  %v2414_v18 = vld [vmem:[#allocation2 + $0x1d8] sm:$0xf0]  ;;  %v2289_v19 = vor.u32 %v3247_v9, %v2286_v10  ;;  %v2764_v27 = vld [vmem:[#allocation2 + $0x488] sm:$0xf]  ;;  %v2273_v31 = vor.u32 %v3243_v21, %v2270_v22 }
  0x71   :  { %1487 = vmatpush.bf16.msra.mxu2 %v2685_v23  ;;  %v2477_v23 = vor.u32 %v3297_v16, %v2476_v15  ;;  %v3321_v48 = vld [vmem:[#allocation2 + $0x314] sm:$0xf0]  ;;  %v2445_v59 = vor.u32 %v3289_v45, %v2444_v44  ;;  %v2780_v15 = vld [vmem:[#allocation2 + $0x4a8] sm:$0xf]  ;;  %v2254_v34 = vld [vmem:[#allocation2 + $0x98] sm:$0xf0] }
  0x72   :  { %1475 = vmatpush.bf16.msrb.mxu0 %v2525_v46  ;;  %v2572_v46 = vld [vmem:[#allocation2 + $0x308] sm:$0xf]  ;;  %v3417_v51 = vld [vmem:[#allocation2 + $0x614] sm:$0xf0]  ;;  %v2382_v44 = vld [vmem:[#allocation2 + $0x198] sm:$0xf0]  ;;  %v2257_v45 = vor.u32 %v3239_v33, %v2254_v34 }
  0x73   :  { %1447 = vmatpush.bf16.msrb.mxu1 %v2269_v43  ;;  %v2316_v43 = vld [vmem:[#allocation2 + $0x108] sm:$0xf]  ;;  %v2573_v0 = vor.u32 %v3321_v48, %v2572_v46  ;;  %v3373_v16 = vld [vmem:[#allocation2 + $0x4b4] sm:$0xf0]  ;;  %v2238_v48 = vld [vmem:[#allocation2 + $0x78] sm:$0xf0] }
  0x74   :  { %1460 = vmatpush.bf16.msra.mxu3 %v2413_v39  ;;  %v2812_v39 = vld [vmem:[#allocation2 + $0x4e8] sm:$0xf]  ;;  %v3369_v28 = vld [vmem:[#allocation2 + $0x494] sm:$0xf0]  ;;  %v2350_v9 = vld [vmem:[#allocation2 + $0x158] sm:$0xf0] }
  0x75   :  { %1488 = vmatpush.bf16.msra.mxu2 %v2669_v35  ;;  %v2188_v35 = vld [vmem:[#allocation2 + $0x8] sm:$0xf]  ;;  %v3361_v57 = vld [vmem:[#allocation2 + $0x454] sm:$0xf0]  ;;  %v2334_v21 = vld [vmem:[#allocation2 + $0x138] sm:$0xf0] }
  0x76   :  { %1476 = vmatpush.bf16.msrb.mxu0 %v2509_v62  ;;  %v2189_v52 = vor.u32 %v3225_v38, %v2188_v35  ;;  %v3413_v62 = vld [vmem:[#allocation2 + $0x5f4] sm:$0xf0]  ;;  %v2765_v35 = vor.u32 %v3369_v28, %v2764_v27  ;;  %v2892_v38 = vld [vmem:[#allocation2 + $0x588] sm:$0xf]  ;;  %v3223_v27 = vld [vmem:[#allocation2 + $0xc] sm:$0xf] }
  0x77   :  { %1448 = vmatpush.bf16.msrb.mxu1 %v2253_v58  ;;  %v2813_v58 = vor.u32 %v3381_v40, %v2812_v39  ;;  %v3401_v39 = vld [vmem:[#allocation2 + $0x594] sm:$0xf0]  ;;  %v2748_v40 = vld [vmem:[#allocation2 + $0x468] sm:$0xf]  ;;  %v2190_v28 = vld [vmem:[#allocation2 + $0x18] sm:$0xf0] }
  0x78   :  { %1461 = vmatpush.bf16.msra.mxu3 %v2397_v53  ;;  %v3257_v53 = vld [vmem:[#allocation2 + $0x114] sm:$0xf0]  ;;  %v2893_v46 = vor.u32 %v3401_v39, %v2892_v38  ;;  %v2732_v56 = vld [vmem:[#allocation2 + $0x448] sm:$0xf]  ;;  %v2686_v33 = vld [vmem:[#allocation2 + $0x3f8] sm:$0xf0]  ;;  %v2193_v39 = vor.u32 %v3223_v27, %v2190_v28 }
  0x79   :  { %1489 = vmatpush.bf16.msra.mxu2 %v2653_v49  ;;  %v2956_v49 = vld [vmem:[#allocation2 + $0x608] sm:$0xf]  ;;  %v2317_v5 = vor.u32 %v3257_v53, %v2316_v43  ;;  %v3271_v43 = vld [vmem:[#allocation2 + $0x18c] sm:$0xf]  ;;  %v3397_v53 = vld [vmem:[#allocation2 + $0x574] sm:$0xf0] }
  0x7a   :  { %1477 = vmatpush.bf16.msrb.mxu0 %v2493_v11  ;;  %v2957_v2 = vor.u32 %v3417_v51, %v2956_v49  ;;  %v2385_v51 = vor.u32 %v3271_v43, %v2382_v44  ;;  %v3311_v38 = vld [vmem:[#allocation2 + $0x2cc] sm:$0xf]  ;;  %v2318_v43 = vld [vmem:[#allocation2 + $0x118] sm:$0xf0] }
  0x7b   :  { %1449 = vmatpush.bf16.msrb.mxu1 %v2237_v7  ;;  %2963 = vmatmul.msk.bf16.vlgmr.msrb.gmra.mxu3 %vm1245_vm0, %v3620_v50  ;;  %v2941_v7 = vor.u32 %v3413_v62, %v2940_v61  ;;  %v2622_v28 = vld [vmem:[#allocation2 + $0x378] sm:$0xf0] }
  0x7c   :  { %1462 = vmatpush.bf16.msra.mxu3 %v2381_v4  ;;  %v2430_v4 = vld [vmem:[#allocation2 + $0x1f8] sm:$0xf0] }
  0x7d   :  { %1490 = vmatpush.bf16.msra.mxu2 %v2637_v1  ;;  %v3377_v1 = vld [vmem:[#allocation2 + $0x4d4] sm:$0xf0]  ;;  %v2433_v12 = vor.u32 %v3283_v3, %v2430_v4  ;;  %v2860_v3 = vld [vmem:[#allocation2 + $0x548] sm:$0xf] }
  0x7e   :  { %1478 = vmatpush.bf16.msrb.mxu0 %v2477_v23  ;;  %v2797_v11 = vor.u32 %v3377_v1, %v2796_v63  ;;  %v2781_v23 = vor.u32 %v3373_v16, %v2780_v15  ;;  %v3231_v63 = vld [vmem:[#allocation2 + $0x4c] sm:$0xf]  ;;  %v2733_v1 = vor.u32 %v3361_v57, %v2732_v56  ;;  %v3393_v4 = vld [vmem:[#allocation2 + $0x554] sm:$0xf0]  ;;  %v2844_v16 = vld [vmem:[#allocation2 + $0x528] sm:$0xf] }
  0x7f   :  { %1450 = vmatpush.bf16.msrb.mxu1 %v2221_v20  ;;  %v3375_v56 = vld [vmem:[#allocation2 + $0x4cc] sm:$0xf]  ;;  %v2798_v57 = vld [vmem:[#allocation2 + $0x4d8] sm:$0xf0] }
  0x80   :  { %1463 = vmatpush.bf16.msra.mxu3 %v2365_v17  ;;  %v3279_v17 = vld [vmem:[#allocation2 + $0x1cc] sm:$0xf] }
  0x81   :  { %1491 = vmatpush.bf16.msra.mxu2 %v2621_v14  ;;  %v3409_v14 = vld [vmem:[#allocation2 + $0x5d4] sm:$0xf0]  ;;  %v2417_v24 = vor.u32 %v3279_v17, %v2414_v18  ;;  %v2700_v18 = vld [vmem:[#allocation2 + $0x408] sm:$0xf] }
  0x82   :  { %1479 = vmatpush.bf16.msrb.mxu0 %v2461_v36  ;;  %v2925_v20 = vor.u32 %v3409_v14, %v2924_v13  ;;  %v2206_v13 = vld [vmem:[#allocation2 + $0x38] sm:$0xf0]  ;;  %v3389_v17 = vld [vmem:[#allocation2 + $0x534] sm:$0xf0] }
  0x83   :  { %1451 = vmatpush.bf16.msrb.mxu1 %v2205_v32 }
  0x84   :  { %1464 = vmatpush.bf16.msra.mxu3 %v2349_v29  ;;  %v3275_v29 = vld [vmem:[#allocation2 + $0x1ac] sm:$0xf] }
  0x85   :  { %1492 = vmatpush.bf16.msra.mxu2 %v2605_v26  ;;  %v3405_v26 = vld [vmem:[#allocation2 + $0x5b4] sm:$0xf0]  ;;  %v2401_v36 = vor.u32 %v3275_v29, %v2398_v30 }
  0x86   :  { %1480 = vmatpush.bf16.msrb.mxu0 %v2445_v59  ;;  %v2909_v32 = vor.u32 %v3405_v26, %v2908_v25  ;;  %v2366_v59 = vld [vmem:[#allocation2 + $0x178] sm:$0xf0]  ;;  %v2845_v25 = vor.u32 %v3389_v17, %v2844_v16  ;;  %v2828_v26 = vld [vmem:[#allocation2 + $0x508] sm:$0xf] }
  0x87   :  { %1452 = vmatpush.bf16.msrb.mxu1 %v2189_v52  ;;  %v2876_v52 = vld [vmem:[#allocation2 + $0x568] sm:$0xf]  ;;  %v2638_v17 = vld [vmem:[#allocation2 + $0x398] sm:$0xf0] }
  0x88   :  { %1465 = vmatpush.bf16.msra.mxu3 %v2333_v47  ;;  %v3235_v47 = vld [vmem:[#allocation2 + $0x6c] sm:$0xf]  ;;  %v2877_v62 = vor.u32 %v3397_v53, %v2876_v52  ;;  %v2670_v53 = vld [vmem:[#allocation2 + $0x3d8] sm:$0xf0] }
  0x89   :  { %1493 = vmatpush.bf16.msra.mxu2 %v2589_v41  ;;  %1481 = vmatmul.bf16.vlgmr.msrb.gmra.mxu0 %v3596_v54  ;;  %v3365_v41 = vld [vmem:[#allocation2 + $0x474] sm:$0xf0]  ;;  %v2241_v61 = vor.u32 %v3235_v47, %v2238_v48 }
  0x8a   :  { %1536 = vmatpush.bf16.msra.mxu0 %v2957_v2  ;;  %1453 = vmatmul.bf16.vlgmr.msrb.gmra.mxu1 %v3598_v55  ;;  %v2749_v49 = vor.u32 %v3365_v41, %v2748_v40  ;;  %v2542_v40 = vld [vmem:[#allocation2 + $0x2d8] sm:$0xf0]  ;;  %v3255_v41 = vld [vmem:[#allocation2 + $0x10c] sm:$0xf] }
  0x8b   :  { %1501 = vmatpush.bf16.msra.mxu1 %v2813_v58  ;;  %v3267_v58 = vld [vmem:[#allocation2 + $0x16c] sm:$0xf]  ;;  %v2321_v52 = vor.u32 %v3255_v41, %v2318_v43  ;;  %v2734_v43 = vld [vmem:[#allocation2 + $0x458] sm:$0xf0] }
  0x8c   :  { %1466 = vmatpush.bf16.msra.mxu3 %v2317_v5  ;;  %v2369_v2 = vor.u32 %v3267_v58, %v2366_v59  ;;  %v2716_v5 = vld [vmem:[#allocation2 + $0x428] sm:$0xf]  ;;  %v3307_v59 = vld [vmem:[#allocation2 + $0x2ac] sm:$0xf] }
  0x8d   :  { %1494 = vmatpush.bf16.msra.mxu2 %v2573_v0  ;;  %v2222_v0 = vld [vmem:[#allocation2 + $0x58] sm:$0xf0]  ;;  %v3359_v41 = vld [vmem:[#allocation2 + $0x44c] sm:$0xf] }
  0x8e   :  { %1557 = vmatpush.bf16.msrb.mxu0 %v2433_v12  ;;  %v2225_v10 = vor.u32 %v3231_v63, %v2222_v0  ;;  %v3227_v12 = vld [vmem:[#allocation2 + $0x2c] sm:$0xf]  ;;  %v2926_v63 = vld [vmem:[#allocation2 + $0x5d8] sm:$0xf0] }
  0x8f   :  { %1502 = vmatpush.bf16.msra.mxu1 %v2797_v11  ;;  %1467 = vmatmul.bf16.vlgmr.msra.gmra.mxu3 %v3610_v8  ;;  %v2861_v11 = vor.u32 %v3393_v4, %v2860_v3  ;;  %v2209_v22 = vor.u32 %v3227_v12, %v2206_v13  ;;  %v2654_v4 = vld [vmem:[#allocation2 + $0x3b8] sm:$0xf0] }
  0x90   :  { %1515 = vmatpush.bf16.msrb.mxu3 %v2941_v7  ;;  %1495 = vmatmul.bf16.vlgmr.msra.gmra.mxu2 %v3600_v60  ;;  %v3263_v7 = vld [vmem:[#allocation2 + $0x14c] sm:$0xf]  ;;  %v2910_v12 = vld [vmem:[#allocation2 + $0x5b8] sm:$0xf0] }
  0x91   :  { %1543 = vmatpush.bf16.msrb.mxu2 %v2305_v6  ;;  %v3357_v6 = vld [vmem:[#allocation2 + $0x434] sm:$0xf0]  ;;  %v2353_v15 = vor.u32 %v3263_v7, %v2350_v9  ;;  %v3303_v9 = vld [vmem:[#allocation2 + $0x28c] sm:$0xf] }
  0x92   :  { %1558 = vmatpush.bf16.msrb.mxu0 %v2417_v24  ;;  %v2717_v14 = vor.u32 %v3357_v6, %v2716_v5  ;;  %v2558_v24 = vld [vmem:[#allocation2 + $0x2f8] sm:$0xf0]  ;;  %v3371_v5 = vld [vmem:[#allocation2 + $0x4ac] sm:$0xf] }
  0x93   :  { %1503 = vmatpush.bf16.msra.mxu1 %v2781_v23  ;;  %v3315_v23 = vld [vmem:[#allocation2 + $0x2ec] sm:$0xf]  ;;  %v2782_v6 = vld [vmem:[#allocation2 + $0x4b8] sm:$0xf0] }
  0x94   :  { %1516 = vmatpush.bf16.msrb.mxu3 %v2925_v20  ;;  %v3259_v20 = vld [vmem:[#allocation2 + $0x12c] sm:$0xf]  ;;  %v2561_v34 = vor.u32 %v3315_v23, %v2558_v24 }
  0x95   :  { %1544 = vmatpush.bf16.msrb.mxu2 %v2289_v19  ;;  %v3353_v19 = vld [vmem:[#allocation2 + $0x414] sm:$0xf0]  ;;  %v2337_v30 = vor.u32 %v3259_v20, %v2334_v21  ;;  %v3299_v21 = vld [vmem:[#allocation2 + $0x26c] sm:$0xf] }
  0x96   :  { %1559 = vmatpush.bf16.msrb.mxu0 %v2401_v36  ;;  %v2701_v29 = vor.u32 %v3353_v19, %v2700_v18  ;;  %v2814_v36 = vld [vmem:[#allocation2 + $0x4f8] sm:$0xf0]  ;;  %v3367_v18 = vld [vmem:[#allocation2 + $0x48c] sm:$0xf] }
  0x97   :  { %1504 = vmatpush.bf16.msra.mxu1 %v2765_v35  ;;  %v3379_v35 = vld [vmem:[#allocation2 + $0x4ec] sm:$0xf]  ;;  %v2766_v19 = vld [vmem:[#allocation2 + $0x498] sm:$0xf0] }
  0x98   :  { %1517 = vmatpush.bf16.msrb.mxu3 %v2909_v32  ;;  %v3347_v32 = vld [vmem:[#allocation2 + $0x3ec] sm:$0xf]  ;;  %v2817_v48 = vor.u32 %v3379_v35, %v2814_v36 }
  0x99   :  { %1545 = vmatpush.bf16.msrb.mxu2 %v2273_v31  ;;  %2964 = vmatmul.msk.bf16.vlgmr.msra.gmra.mxu0 %vm1245_vm0, %v3620_v50  ;;  %v3385_v31 = vld [vmem:[#allocation2 + $0x514] sm:$0xf0]  ;;  %v2689_v47 = vor.u32 %v3347_v32, %v2686_v33  ;;  %v3399_v23 = vld [vmem:[#allocation2 + $0x58c] sm:$0xf] }
  0x9a   :  { %1560 = vmatpush.bf16.msrb.mxu0 %v2385_v51  ;;  %v2829_v44 = vor.u32 %v3385_v31, %v2828_v26  ;;  %v2545_v51 = vor.u32 %v3311_v38, %v2542_v40  ;;  %v3331_v26 = vld [vmem:[#allocation2 + $0x36c] sm:$0xf]  ;;  %v2606_v40 = vld [vmem:[#allocation2 + $0x358] sm:$0xf0] }
  0x9b   :  { %1505 = vmatpush.bf16.msra.mxu1 %v2749_v49  ;;  %v3343_v49 = vld [vmem:[#allocation2 + $0x3cc] sm:$0xf]  ;;  %v2625_v35 = vor.u32 %v3331_v26, %v2622_v28  ;;  %v3431_v28 = vld [vmem:[%s4084_s3 + $0x64] sm:$0xf0] }
  0x9c   :  { %1518 = vmatpush.bf16.msrb.mxu3 %v2893_v46  ;;  %v2942_v46 = vld [vmem:[#allocation2 + $0x5f8] sm:$0xf0]  ;;  %v2673_v0 = vor.u32 %v3343_v49, %v2670_v53  ;;  %v3295_v32 = vld [vmem:[#allocation2 + $0x24c] sm:$0xf] }
  0x9d   :  { %1546 = vmatpush.bf16.msrb.mxu2 %v2257_v45  ;;  %v3411_v45 = vld [vmem:[#allocation2 + $0x5ec] sm:$0xf] }
  0x9e   :  { %1561 = vmatpush.bf16.msrb.mxu0 %v2369_v2  ;;  %v2945_v58 = vor.u32 %v3411_v45, %v2942_v46  ;;  %v3339_v2 = vld [vmem:[#allocation2 + $0x3ac] sm:$0xf]  ;;  %v2462_v46 = vld [vmem:[#allocation2 + $0x238] sm:$0xf0] }
  0x9f   :  { %1506 = vmatpush.bf16.msra.mxu1 %v2733_v1  ;;  %v2801_v1 = vor.u32 %v3375_v56, %v2798_v57  ;;  %v2657_v13 = vor.u32 %v3339_v2, %v2654_v4  ;;  %v3395_v33 = vld [vmem:[#allocation2 + $0x56c] sm:$0xf]  ;;  %v2590_v57 = vld [vmem:[#allocation2 + $0x338] sm:$0xf0] }
  0xa0   :  { %1519 = vmatpush.bf16.msrb.mxu3 %v2877_v62  ;;  %v3407_v62 = vld [vmem:[#allocation2 + $0x5cc] sm:$0xf]  ;;  %v2846_v2 = vld [vmem:[#allocation2 + $0x538] sm:$0xf0] }
  0xa1   :  { %1547 = vmatpush.bf16.msrb.mxu2 %v2241_v61  ;;  %v2526_v61 = vld [vmem:[#allocation2 + $0x2b8] sm:$0xf0]  ;;  %v2929_v7 = vor.u32 %v3407_v62, %v2926_v63  ;;  %v3327_v38 = vld [vmem:[#allocation2 + $0x34c] sm:$0xf] }
  0xa2   :  { %1562 = vmatpush.bf16.msrb.mxu0 %v2353_v15  ;;  %v2529_v3 = vor.u32 %v3307_v59, %v2526_v61  ;;  %v3335_v15 = vld [vmem:[#allocation2 + $0x38c] sm:$0xf]  ;;  %v2609_v49 = vor.u32 %v3327_v38, %v2606_v40  ;;  %v2718_v59 = vld [vmem:[#allocation2 + $0x438] sm:$0xf0]  ;;  %v3429_v38 = vld [vmem:[%s4084_s3 + $0x54] sm:$0xf0] }
  0xa3   :  { %1507 = vmatpush.bf16.msra.mxu1 %v2717_v14  ;;  %v2785_v14 = vor.u32 %v3371_v5, %v2782_v6  ;;  %v2641_v24 = vor.u32 %v3335_v15, %v2638_v17  ;;  %v3291_v45 = vld [vmem:[#allocation2 + $0x22c] sm:$0xf]  ;;  %v2958_v4 = vld [vmem:[#allocation2 + $0x618] sm:$0xf0]  ;;  %v3433_v17 = vld [vmem:[%s4084_s3 + $0x74] sm:$0xf0] }
  0xa4   :  { %1520 = vmatpush.bf16.msrb.mxu3 %v2861_v11  ;;  %v3403_v11 = vld [vmem:[#allocation2 + $0x5ac] sm:$0xf]  ;;  %v2465_v56 = vor.u32 %v3291_v45, %v2462_v46 }
  0xa5   :  { %1548 = vmatpush.bf16.msrb.mxu2 %v2225_v10  ;;  %v2510_v10 = vld [vmem:[#allocation2 + $0x298] sm:$0xf0]  ;;  %v2913_v20 = vor.u32 %v3403_v11, %v2910_v12  ;;  %v3287_v63 = vld [vmem:[#allocation2 + $0x20c] sm:$0xf] }
  0xa6   :  { %1563 = vmatpush.bf16.msrb.mxu0 %v2337_v30  ;;  %v2513_v16 = vor.u32 %v3303_v9, %v2510_v10  ;;  %v2750_v30 = vld [vmem:[#allocation2 + $0x478] sm:$0xf0]  ;;  %v3319_v10 = vld [vmem:[#allocation2 + $0x30c] sm:$0xf] }
  0xa7   :  { %1508 = vmatpush.bf16.msra.mxu1 %v2701_v29  ;;  %v3363_v29 = vld [vmem:[#allocation2 + $0x46c] sm:$0xf]  ;;  %v2574_v11 = vld [vmem:[#allocation2 + $0x318] sm:$0xf0] }
  0xa8   :  { %1521 = vmatpush.bf16.msrb.mxu3 %v2845_v25  ;;  %v2769_v25 = vor.u32 %v3367_v18, %v2766_v19  ;;  %v2753_v36 = vor.u32 %v3363_v29, %v2750_v30  ;;  %v3351_v12 = vld [vmem:[#allocation2 + $0x40c] sm:$0xf]  ;;  %v3673_v18 = vld [vmem:[%s4083_s2] sm:$0xf] }
  0xa9   :  { %1549 = vmatpush.bf16.msrb.mxu2 %v2209_v22  ;;  %v2494_v22 = vld [vmem:[#allocation2 + $0x278] sm:$0xf0]  ;;  %v1258_v53 = vpop.f32.mrf.mxu0  ;;  %v3383_v19 = vld [vmem:[#allocation2 + $0x50c] sm:$0xf] }
  0xaa   :  { %1509 = vmatmul.bf16.vlgmr.msra.gmra.mxu1 %v3636_v37  ;;  %1564 = vmatpush.bf16.msrb.mxu0 %v2321_v52  ;;  %v2497_v27 = vor.u32 %v3299_v21, %v2494_v22  ;;  %v3323_v52 = vld [vmem:[#allocation2 + $0x32c] sm:$0xf]  ;;  %v2577_v21 = vor.u32 %v3319_v10, %v2574_v11 }
  0xab   :  { %1571 = vmatpush.bf16.msrb.mxu1 %v2561_v34  ;;  %v2878_v34 = vld [vmem:[#allocation2 + $0x578] sm:$0xf0]  ;;  %v2593_v5 = vor.u32 %v3323_v52, %v2590_v57  ;;  %v3443_v52 = vld [vmem:[%s4084_s3 + $0xc4] sm:$0xf0]  ;;  %v2992_v57 = vld [vmem:[%s4084_s3 + $0x30] sm:$0xf] }
  0xac   :  { %1522 = vmatpush.bf16.msrb.mxu3 %v2829_v44  ;;  %v2881_v44 = vor.u32 %v3395_v33, %v2878_v34  ;;  %v3080_v33 = vld [vmem:[%s4084_s3 + $0xe0] sm:$0xf]  ;;  %v3447_v34 = vld [vmem:[%s4084_s3 + $0xe4] sm:$0xf0] }
  0xad   :  { %1550 = vmatpush.bf16.msrb.mxu2 %v2193_v39  ;;  %1565 = vmatmul.bf16.vlgmr.msrb.gmra.mxu0 %v3610_v8  ;;  %v2478_v8 = vld [vmem:[#allocation2 + $0x258] sm:$0xf0]  ;;  %v3660_v61 = vpop.f32.mrf.mxu1 }
  0xae   :  { %1613 = vmatpush.bf16.msra.mxu0 %v2945_v58  ;;  %v2481_v39 = vor.u32 %v3295_v32, %v2478_v8  ;;  %v3355_v58 = vld [vmem:[#allocation2 + $0x42c] sm:$0xf] }
  0xaf   :  { %1572 = vmatpush.bf16.msrb.mxu1 %v2545_v51  ;;  %1523 = vmatmul.bf16.vlgmr.msrb.gmra.mxu3 %v3638_v42  ;;  %v2737_v51 = vor.u32 %v3359_v41, %v2734_v43  ;;  %v2721_v6 = vor.u32 %v3355_v58, %v2718_v59  ;;  %v3072_v43 = vld [vmem:[%s4084_s3 + $0xd0] sm:$0xf]  ;;  %v3425_v58 = vld [vmem:[%s4084_s3 + $0x34] sm:$0xf0] }
  0xb0   :  { %1585 = vmatpush.bf16.msra.mxu3 %v2689_v47  ;;  %1551 = vmatmul.bf16.vlgmr.msrb.gmra.mxu2 %v3598_v55  ;;  %v2894_v55 = vld [vmem:[#allocation2 + $0x598] sm:$0xf0]  ;;  %v3391_v47 = vld [vmem:[#allocation2 + $0x54c] sm:$0xf]  ;;  %v1300_v32 = vpop.f32.mrf.mxu3 }
  0xb1   :  { %1599 = vmatpush.bf16.msra.mxu2 %v2817_v48  ;;  %v2897_v31 = vor.u32 %v3399_v23, %v2894_v55  ;;  %v2862_v48 = vld [vmem:[#allocation2 + $0x558] sm:$0xf0]  ;;  %v3088_v55 = vld [vmem:[%s4084_s3 + $0xf0] sm:$0xf]  ;;  %v1260_v30 = vpop.f32.mrf.mxu0 }
  0xb2   :  { %1614 = vmatpush.bf16.msra.mxu0 %v2929_v7  ;;  %v2865_v62 = vor.u32 %v3391_v47, %v2862_v48  ;;  %v3662_v7 = vpop.f32.mrf.mxu2 }
  0xb3   :  { %1573 = vmatpush.bf16.msrb.mxu1 %v2529_v3  ;;  %v3415_v3 = vld [vmem:[#allocation2 + $0x60c] sm:$0xf] }
  0xb4   :  { %1586 = vmatpush.bf16.msra.mxu3 %v2673_v0  ;;  %v2446_v0 = vld [vmem:[#allocation2 + $0x218] sm:$0xf0]  ;;  %v2961_v15 = vor.u32 %v3415_v3, %v2958_v4  ;;  %v2984_v4 = vld [vmem:[%s4084_s3 + $0x20] sm:$0xf] }
  0xb5   :  { %1600 = vmatpush.bf16.msra.mxu2 %v2801_v1  ;;  %v3387_v1 = vld [vmem:[#allocation2 + $0x52c] sm:$0xf]  ;;  %v2449_v9 = vor.u32 %v3287_v63, %v2446_v0  ;;  %v2993_v63 = vor.u32 %v3425_v58, %v2992_v57  ;;  %v3056_v0 = vld [vmem:[%s4084_s3 + $0xb0] sm:$0xf] }
  0xb6   :  { %1615 = vmatpush.bf16.msra.mxu0 %v2913_v20  ;;  %v2830_v20 = vld [vmem:[#allocation2 + $0x518] sm:$0xf0] }
  0xb7   :  { %1574 = vmatpush.bf16.msrb.mxu1 %v2513_v16  ;;  %v3024_v16 = vld [vmem:[%s4084_s3 + $0x70] sm:$0xf]  ;;  %v2833_v26 = vor.u32 %v3383_v19, %v2830_v20 }
  0xb8   :  { %1587 = vmatpush.bf16.msra.mxu3 %v2657_v13  ;;  %v2849_v13 = vor.u32 %v3387_v1, %v2846_v2  ;;  %v3025_v23 = vor.u32 %v3433_v17, %v3024_v16  ;;  %v3441_v1 = vld [vmem:[%s4084_s3 + $0xb4] sm:$0xf0]  ;;  %v2976_v16 = vld [vmem:[%s4084_s3 + $0x10] sm:$0xf] }
  0xb9   :  { %1601 = vmatpush.bf16.msra.mxu2 %v2785_v14  ;;  %v2702_v14 = vld [vmem:[#allocation2 + $0x418] sm:$0xf0] }
  0xba   :  { %1616 = vmatpush.bf16.msra.mxu0 %v2897_v31  ;;  %v2705_v22 = vor.u32 %v3351_v12, %v2702_v14  ;;  %v1274_v31 = vpop.f32.mrf.mxu1  ;;  %v1288_v40 = vpop.f32.mrf.mxu2  ;;  %v3439_v14 = vld [vmem:[%s4084_s3 + $0xa4] sm:$0xf0] }
  0xbb   :  { %1575 = vmatpush.bf16.msrb.mxu1 %v2497_v27  ;;  %v3016_v27 = vld [vmem:[%s4084_s3 + $0x60] sm:$0xf] }
  0xbc   :  { %1588 = vmatpush.bf16.msra.mxu3 %v2641_v24  ;;  %v3449_v24 = vld [vmem:[%s4084_s3 + $0xf4] sm:$0xf0]  ;;  %v3017_v8 = vor.u32 %v3431_v28, %v3016_v27  ;;  %v3432_v27 = vld [vmem:[%s4084_s3 + $0x74] sm:$0xf]  ;;  %v3026_v28 = vld [vmem:[%s4084_s3 + $0x78] sm:$0xf0] }
  0xbd   :  { %1602 = vmatpush.bf16.msra.mxu2 %v2769_v25  ;;  %v257_v25 = vperm.slane %v3673_v18, 0  ;;  %v3089_v29 = vor.u32 %v3449_v24, %v3088_v55  ;;  %v2968_v24 = vld [vmem:[%s4084_s3] sm:$0xf] }
  0xbe   :  { %1617 = vmatpush.bf16.msra.mxu0 %v2881_v44  ;;  %v3445_v44 = vld [vmem:[%s4084_s3 + $0xd4] sm:$0xf0] }
  0xbf   :  { %1576 = vmatpush.bf16.msrb.mxu1 %v2481_v39  ;;  %v3081_v39 = vor.u32 %v3447_v34, %v3080_v33  ;;  %v3029_v34 = vor.u32 %v3432_v27, %v3026_v28  ;;  %v3042_v27 = vld [vmem:[%s4084_s3 + $0x98] sm:$0xf0] }
  0xc0   :  { %1589 = vmatpush.bf16.msra.mxu3 %v2625_v35  ;;  %v1259_v35 = vadd.f32 %v1258_v53, %v257_v25 }
  0xc1   :  { %1603 = vmatpush.bf16.msra.mxu2 %v2753_v36  ;;  %v1261_v36 = vadd.f32 %v1260_v30, %v257_v25  ;;  %v3419_v25 = vld [vmem:[%s4084_s3 + $0x4] sm:$0xf0] }
  0xc2   :  { %1618 = vmatpush.bf16.msra.mxu0 %v2865_v62  ;;  %v1273_v45 = vadd.f32 %v3660_v61, %v1259_v35  ;;  %v1302_v61 = vpop.f32.mrf.mxu3  ;;  %v1342_v62 = vpop.f32.mrf.mxu2  ;;  %v2969_v30 = vor.u32 %v3419_v25, %v2968_v24 }
  0xc3   :  { %1577 = vmatpush.bf16.msrb.mxu1 %v2465_v56  ;;  %v1275_v46 = vadd.f32 %v1274_v31, %v1261_v36  ;;  %v3032_v31 = vld [vmem:[%s4084_s3 + $0x80] sm:$0xf]  ;;  %v3448_v36 = vld [vmem:[%s4084_s3 + $0xf4] sm:$0xf] }
  0xc4   :  { %1590 = vmatpush.bf16.msra.mxu3 %v2609_v49  ;;  %v1287_v53 = vadd.f32 %v3662_v7, %v1273_v45  ;;  %v3446_v45 = vld [vmem:[%s4084_s3 + $0xe4] sm:$0xf] }
  0xc5   :  { %1604 = vmatpush.bf16.msra.mxu2 %v2737_v51  ;;  %v3064_v51 = vld [vmem:[%s4084_s3 + $0xc0] sm:$0xf]  ;;  %v1289_v56 = vadd.f32 %v1288_v40, %v1275_v46  ;;  %v3082_v46 = vld [vmem:[%s4084_s3 + $0xe8] sm:$0xf0] }
  0xc6   :  { %1619 = vmatpush.bf16.msra.mxu0 %v2849_v13  ;;  %v1314_v47 = vpop.f32.mrf.mxu0  ;;  %v3065_v59 = vor.u32 %v3443_v52, %v3064_v51  ;;  %v1301_v2 = vadd.f32 %v1300_v32, %v1287_v53  ;;  %v3048_v13 = vld [vmem:[%s4084_s3 + $0xa0] sm:$0xf]  ;;  %v3435_v32 = vld [vmem:[%s4084_s3 + $0x84] sm:$0xf0]  ;;  %v3426_v51 = vld [vmem:[%s4084_s3 + $0x44] sm:$0xf] }
  0xc7   :  { %1578 = vmatpush.bf16.msrb.mxu1 %v2449_v9  ;;  %v1328_v48 = vpop.f32.mrf.mxu1  ;;  %v1303_v3 = vadd.f32 %v1302_v61, %v1289_v56  ;;  %v3049_v17 = vor.u32 %v3439_v14, %v3048_v13  ;;  %v3033_v35 = vor.u32 %v3435_v32, %v3032_v31  ;;  %v3002_v52 = vld [vmem:[%s4084_s3 + $0x48] sm:$0xf0] }
  0xc8   :  { %1591 = vmatpush.bf16.msra.mxu3 %v2593_v5  ;;  %v3423_v5 = vld [vmem:[%s4084_s3 + $0x24] sm:$0xf0]  ;;  %v1315_v9 = vadd.f32 %v1314_v47, %v1301_v2  ;;  %v3005_v58 = vor.u32 %v3426_v51, %v3002_v52  ;;  %v3066_v61 = vld [vmem:[%s4084_s3 + $0xc8] sm:$0xf0]  ;;  %v3440_v2 = vld [vmem:[%s4084_s3 + $0xb4] sm:$0xf] }
  0xc9   :  { %1605 = vmatpush.bf16.msra.mxu2 %v2721_v6  ;;  %v3057_v6 = vor.u32 %v3441_v1, %v3056_v0  ;;  %v2985_v12 = vor.u32 %v3423_v5, %v2984_v4  ;;  %v3422_v4 = vld [vmem:[%s4084_s3 + $0x24] sm:$0xf]  ;;  %v2986_v5 = vld [vmem:[%s4084_s3 + $0x28] sm:$0xf0]  ;;  %v3457_v51 = vld [vmem:[%s4084_s3 + $0x134] sm:$0xf0] }
  0xca   :  { %1579 = vmatmul.bf16.vlgmr.msrb.gmra.mxu1 %v3596_v54  ;;  %1620 = vmatpush.bf16.msra.mxu0 %v2833_v26  ;;  %v3008_v54 = vld [vmem:[%s4084_s3 + $0x50] sm:$0xf]  ;;  %v1329_v19 = vadd.f32 %v1328_v48, %v1315_v9  ;;  %v1344_v20 = vpop.f32.mrf.mxu2  ;;  %v3444_v48 = vld [vmem:[%s4084_s3 + $0xd4] sm:$0xf] }
  0xcb   :  { %1634 = vmatpush.bf16.msra.mxu1 %v2961_v15  ;;  %v3009_v41 = vor.u32 %v3429_v38, %v3008_v54  ;;  %v3090_v54 = vld [vmem:[%s4084_s3 + $0xf8] sm:$0xf0]  ;;  %v3430_v38 = vld [vmem:[%s4084_s3 + $0x64] sm:$0xf] }
  0xcc   :  { %1592 = vmatpush.bf16.msra.mxu3 %v2577_v21  ;;  %v3093_v40 = vor.u32 %v3448_v36, %v3090_v54 }
  0xcd   :  { %1606 = vmatpush.bf16.msra.mxu2 %v2705_v22  ;;  %1621 = vmatmul.bf16.vlgmr.msra.gmra.mxu0 %v3638_v42  ;;  %v3073_v42 = vor.u32 %v3445_v44, %v3072_v43  ;;  %v3040_v22 = vld [vmem:[%s4084_s3 + $0x90] sm:$0xf] }
  0xce   :  { %v1316_v7 = vpop.f32.mrf.mxu0  ;;  %v3780_v33 = vpop.f32.mrf.mxu3 }
  0xcf   :  { %2057 = vmatpush.bf16.msrb.mxu1 %v3089_v29  ;;  %1593 = vmatmul.bf16.vlgmr.msra.gmra.mxu3 %v3600_v60  ;;  %v3000_v60 = vld [vmem:[%s4084_s3 + $0x40] sm:$0xf]  ;;  %v1317_v10 = vadd.f32 %v1316_v7, %v1303_v3  ;;  %v1330_v11 = vpop.f32.mrf.mxu1  ;;  %v1343_v29 = vadd.f32 %v1342_v62, %v1329_v19  ;;  %v3424_v62 = vld [vmem:[%s4084_s3 + $0x34] sm:$0xf]  ;;  %v3058_v3 = vld [vmem:[%s4084_s3 + $0xb8] sm:$0xf0] }
  0xd0   :  { %2043 = vmatpush.bf16.msrb.mxu3 %v3025_v23  ;;  %1607 = vmatmul.bf16.vlgmr.msra.gmra.mxu2 %v3636_v37  ;;  %v3427_v37 = vld [vmem:[%s4084_s3 + $0x44] sm:$0xf0]  ;;  %v3437_v23 = vld [vmem:[%s4084_s3 + $0x94] sm:$0xf0]  ;;  %v2978_v19 = vld [vmem:[%s4084_s3 + $0x18] sm:$0xf0] }
  0xd1   :  { %v3001_v49 = vor.u32 %v3427_v37, %v3000_v60  ;;  %v1331_v15 = vadd.f32 %v1330_v11, %v1317_v10  ;;  %v3041_v26 = vor.u32 %v3437_v23, %v3040_v22  ;;  %v3428_v60 = vld [vmem:[%s4084_s3 + $0x54] sm:$0xf]  ;;  %v3010_v37 = vld [vmem:[%s4084_s3 + $0x58] sm:$0xf0]  ;;  %v3152_v10 = vld [vmem:[%s4084_s3 + $0x170] sm:$0xf] }
  0xd2   :  { %v3013_v47 = vor.u32 %v3428_v60, %v3010_v37  ;;  %v3465_v11 = vld [vmem:[%s4084_s3 + $0x174] sm:$0xf0]  ;;  %v3144_v22 = vld [vmem:[%s4084_s3 + $0x160] sm:$0xf]  ;;  %v3463_v23 = vld [vmem:[%s4084_s3 + $0x164] sm:$0xf0] }
  0xd3   :  { %2058 = vmatpush.bf16.msrb.mxu1 %v3081_v39  ;;  %v1345_v55 = vadd.f32 %v1344_v20, %v1331_v15  ;;  %v3018_v39 = vld [vmem:[%s4084_s3 + $0x68] sm:$0xf0]  ;;  %v1370_v56 = vpop.f32.mrf.mxu2  ;;  %v3153_v13 = vor.u32 %v3465_v11, %v3152_v10  ;;  %v2989_v15 = vor.u32 %v3422_v4, %v2986_v5  ;;  %v3145_v24 = vor.u32 %v3463_v23, %v3144_v22  ;;  %v3459_v60 = vld [vmem:[%s4084_s3 + $0x144] sm:$0xf0]  ;;  %v3096_v10 = vld [vmem:[%s4084_s3 + $0x100] sm:$0xf] }
  0xd4   :  { %2044 = vmatpush.bf16.msrb.mxu3 %v3017_v8  ;;  %v3021_v44 = vor.u32 %v3430_v38, %v3018_v39  ;;  %v3434_v39 = vld [vmem:[%s4084_s3 + $0x84] sm:$0xf]  ;;  %v3451_v11 = vld [vmem:[%s4084_s3 + $0x104] sm:$0xf0]  ;;  %v3481_v22 = vld [vmem:[%s4084_s3 + $0x1f4] sm:$0xf0] }
  0xd5   :  { %v1645_v8 = vmax.f32 %v1345_v55, 0.0  ;;  %2071 = vmatpush.bf16.msrb.mxu2 %v3153_v13  ;;  %v3097_v13 = vor.u32 %v3451_v11, %v3096_v10 }
  0xd6   :  { %v1358_v57 = vpop.f32.mrf.mxu3 }
  0xd7   :  { %2059 = vmatpush.bf16.msrb.mxu1 %v3073_v42  ;;  %v3085_v42 = vor.u32 %v3446_v45, %v3082_v46  ;;  %v3128_v46 = vld [vmem:[%s4084_s3 + $0x140] sm:$0xf] }
  0xd8   :  { %2045 = vmatpush.bf16.msrb.mxu3 %v3009_v41  ;;  %v1641_v41 = vmax.f32 %v1343_v29, 0.0  ;;  %v3418_v29 = vld [vmem:[%s4084_s3 + $0x4] sm:$0xf] }
  0xd9   :  { %2072 = vmatpush.bf16.msrb.mxu2 %v3145_v24  ;;  %v3460_v24 = vld [vmem:[%s4084_s3 + $0x154] sm:$0xf] }
  0xda   :  { %2965 = vmatmul.msk.bf16.vlgmr.msra.gmra.mxu1 %vm1245_vm0, %v3620_v50  ;;  %v3421_v50 = vld [vmem:[%s4084_s3 + $0x14] sm:$0xf0]  ;;  %v3794_v43 = vpack.c.bf16 %v1645_v8, %v1641_v41  ;;  %v3136_v8 = vld [vmem:[%s4084_s3 + $0x150] sm:$0xf] }
  0xdb   :  { %2060 = vmatpush.bf16.msrb.mxu1 %v3065_v59  ;;  %v2977_v21 = vor.u32 %v3421_v50, %v2976_v16  ;;  %v3442_v59 = vld [vmem:[%s4084_s3 + $0xc4] sm:$0xf]  ;;  %v1372_v14 = vpop.f32.mrf.mxu2  ;;  %v3050_v50 = vld [vmem:[%s4084_s3 + $0xa8] sm:$0xf0] }
  0xdc   :  { %2046 = vmatpush.bf16.msrb.mxu3 %v3001_v49  ;;  %v3074_v49 = vld [vmem:[%s4084_s3 + $0xd8] sm:$0xf0]  ;;  %v3069_v0 = vor.u32 %v3442_v59, %v3066_v61  ;;  %v3438_v16 = vld [vmem:[%s4084_s3 + $0xa4] sm:$0xf]  ;;  %v3112_v61 = vld [vmem:[%s4084_s3 + $0x120] sm:$0xf] }
  0xdd   :  { %v3077_v53 = vor.u32 %v3444_v48, %v3074_v49  ;;  %v3053_v20 = vor.u32 %v3438_v16, %v3050_v50  ;;  %v3120_v49 = vld [vmem:[%s4084_s3 + $0x130] sm:$0xf]  ;;  %v3462_v50 = vld [vmem:[%s4084_s3 + $0x164] sm:$0xf] }
  0xdf   :  { %2061 = vmatpush.bf16.msrb.mxu1 %v3057_v6  ;;  %v3061_v6 = vor.u32 %v3440_v2, %v3058_v3 }
  0xe0   :  { %2047 = vmatpush.bf16.msrb.mxu3 %v2993_v63  ;;  %v2994_v63 = vld [vmem:[%s4084_s3 + $0x38] sm:$0xf0] }
  0xe1   :  { %v2997_v1 = vor.u32 %v3424_v62, %v2994_v63  ;;  %v3455_v62 = vld [vmem:[%s4084_s3 + $0x124] sm:$0xf0] }
  0xe3   :  { %2062 = vmatpush.bf16.msrb.mxu1 %v3049_v17  ;;  %v3420_v17 = vld [vmem:[%s4084_s3 + $0x14] sm:$0xf] }
  0xe4   :  { %2048 = vmatpush.bf16.msrb.mxu3 %v2985_v12  ;;  %v258_v12 = vperm.slane %v3673_v18, 1  ;;  %v2981_v25 = vor.u32 %v3420_v17, %v2978_v19  ;;  %v3146_v17 = vld [vmem:[%s4084_s3 + $0x168] sm:$0xf0] }
  0xe6   :  { %v1384_v7 = vpop.f32.mrf.mxu0  ;;  %v1357_v55 = vadd.f32 %v3780_v33, %v258_v12  ;;  %v1359_v28 = vadd.f32 %v1358_v57, %v258_v12  ;;  %v3461_v33 = vld [vmem:[%s4084_s3 + $0x154] sm:$0xf0] }
  0xe7   :  { %2063 = vmatpush.bf16.msrb.mxu1 %v3041_v26  ;;  %v3436_v26 = vld [vmem:[%s4084_s3 + $0x94] sm:$0xf] }
  0xe8   :  { %2049 = vmatpush.bf16.msrb.mxu3 %v2977_v21  ;;  %v1398_v21 = vpop.f32.mrf.mxu1  ;;  %v3045_v31 = vor.u32 %v3436_v26, %v3042_v27  ;;  %v1373_v41 = vadd.f32 %v1372_v14, %v1359_v28  ;;  %v3464_v14 = vld [vmem:[%s4084_s3 + $0x174] sm:$0xf]  ;;  %v3208_v27 = vld [vmem:[%s4084_s3 + $0x1e0] sm:$0xf]  ;;  %v3479_v28 = vld [vmem:[%s4084_s3 + $0x1e4] sm:$0xf0] }
  0xeb   :  { %2064 = vmatpush.bf16.msrb.mxu1 %v3033_v35  ;;  %v3137_v35 = vor.u32 %v3461_v33, %v3136_v8  ;;  %v3200_v8 = vld [vmem:[%s4084_s3 + $0x1d0] sm:$0xf]  ;;  %v3477_v33 = vld [vmem:[%s4084_s3 + $0x1d4] sm:$0xf0] }
  0xec   :  { %2050 = vmatpush.bf16.msrb.mxu3 %v2969_v30  ;;  %v2970_v30 = vld [vmem:[%s4084_s3 + $0x8] sm:$0xf0] }
  0xed   :  { %v2973_v38 = vor.u32 %v3418_v29, %v2970_v30  ;;  %2073 = vmatpush.bf16.msrb.mxu2 %v3137_v35  ;;  %v3209_v29 = vor.u32 %v3479_v28, %v3208_v27  ;;  %v3458_v30 = vld [vmem:[%s4084_s3 + $0x144] sm:$0xf]  ;;  %v3201_v35 = vor.u32 %v3477_v33, %v3200_v8  ;;  %v3202_v8 = vld [vmem:[%s4084_s3 + $0x1d8] sm:$0xf0] }
  0xee   :  { %v1412_v9 = vpop.f32.mrf.mxu3  ;;  %v1386_v36 = vpop.f32.mrf.mxu0 }
  0xef   :  { %2113 = vmatpush.bf16.msra.mxu1 %v3093_v40  ;;  %2051 = vmatmul.bf16.vlgmr.msrb.gmra.mxu3 %v3794_v43  ;;  %v3034_v40 = vld [vmem:[%s4084_s3 + $0x88] sm:$0xf0]  ;;  %v1387_v37 = vadd.f32 %v1386_v36, %v1373_v41  ;;  %v3192_v41 = vld [vmem:[%s4084_s3 + $0x1c0] sm:$0xf] }
  0xf0   :  { %2099 = vmatpush.bf16.msra.mxu3 %v3029_v34  ;;  %v1371_v34 = vadd.f32 %v1370_v56, %v1357_v55  ;;  %v3037_v45 = vor.u32 %v3434_v39, %v3034_v40  ;;  %v259_v39 = vperm.slane %v3673_v18, 2 }
  0xf3   :  { %2114 = vmatpush.bf16.msra.mxu1 %v3085_v42  ;;  %v1426_v54 = vpop.f32.mrf.mxu2  ;;  %v3129_v42 = vor.u32 %v3459_v60, %v3128_v46  ;;  %v3454_v60 = vld [vmem:[%s4084_s3 + $0x124] sm:$0xf] }
  0xf4   :  { %2100 = vmatpush.bf16.msra.mxu3 %v3021_v44  ;;  %v1385_v44 = vadd.f32 %v1384_v7, %v1371_v34 }
  0xf5   :  { %2074 = vmatpush.bf16.msrb.mxu2 %v3129_v42 }
  0xf6   :  { %v1414_v32 = vpop.f32.mrf.mxu3  ;;  %v1399_v48 = vadd.f32 %v1398_v21, %v1385_v44  ;;  %v3216_v21 = vld [vmem:[%s4084_s3 + $0x1f0] sm:$0xf]  ;;  %v3475_v44 = vld [vmem:[%s4084_s3 + $0x1c4] sm:$0xf0] }
  0xf7   :  { %2115 = vmatpush.bf16.msra.mxu1 %v3077_v53  ;;  %v3121_v53 = vor.u32 %v3457_v51, %v3120_v49  ;;  %v3217_v23 = vor.u32 %v3481_v22, %v3216_v21  ;;  %v3193_v46 = vor.u32 %v3475_v44, %v3192_v41  ;;  %v3473_v49 = vld [vmem:[%s4084_s3 + $0x1b4] sm:$0xf0] }
  0xf8   :  { %2101 = vmatpush.bf16.msra.mxu3 %v3013_v47  ;;  %v1400_v47 = vpop.f32.mrf.mxu1  ;;  %v1413_v56 = vadd.f32 %v1412_v9, %v1399_v48  ;;  %v3184_v48 = vld [vmem:[%s4084_s3 + $0x1b0] sm:$0xf] }
  0xf9   :  { %v1401_v57 = vadd.f32 %v1400_v47, %v1387_v37  ;;  %2075 = vmatpush.bf16.msrb.mxu2 %v3121_v53  ;;  %2085 = vmatpush.bf16.msrb.mxu0 %v3217_v23  ;;  %v3114_v37 = vld [vmem:[%s4084_s3 + $0x128] sm:$0xf0]  ;;  %v3185_v51 = vor.u32 %v3473_v49, %v3184_v48 }
  0xfa   :  { %v1427_v63 = vadd.f32 %v1426_v54, %v1413_v56  ;;  %v3456_v54 = vld [vmem:[%s4084_s3 + $0x134] sm:$0xf]  ;;  %v3117_v47 = vor.u32 %v3454_v60, %v3114_v37  ;;  %v3186_v60 = vld [vmem:[%s4084_s3 + $0x1b8] sm:$0xf0] }
  0xfb   :  { %2116 = vmatpush.bf16.msra.mxu1 %v3069_v0  ;;  %v1428_v59 = vpop.f32.mrf.mxu2  ;;  %v3113_v0 = vor.u32 %v3455_v62, %v3112_v61 }
  0xfc   :  { %2102 = vmatpush.bf16.msra.mxu3 %v3005_v58  ;;  %v1415_v58 = vadd.f32 %v1414_v32, %v1401_v57  ;;  %v3452_v57 = vld [vmem:[%s4084_s3 + $0x114] sm:$0xf] }
  0xfd   :  { %2076 = vmatpush.bf16.msrb.mxu2 %v3113_v0  ;;  %2086 = vmatpush.bf16.msrb.mxu0 %v3209_v29  ;;  %v3471_v0 = vld [vmem:[%s4084_s3 + $0x1a4] sm:$0xf0] }
  0xfe   :  { %v1440_v52 = vpop.f32.mrf.mxu3  ;;  %v1429_v2 = vadd.f32 %v1428_v59, %v1415_v58  ;;  %v3106_v58 = vld [vmem:[%s4084_s3 + $0x118] sm:$0xf0] }
  0xff   :  { %2117 = vmatpush.bf16.msra.mxu1 %v3061_v6  ;;  %v1441_v3 = vadd.f32 %v1440_v52, %v1427_v63  ;;  %v3109_v62 = vor.u32 %v3452_v57, %v3106_v58  ;;  %v3176_v63 = vld [vmem:[%s4084_s3 + $0x1a0] sm:$0xf]  ;;  %v3170_v57 = vld [vmem:[%s4084_s3 + $0x198] sm:$0xf0] }
 0x100   :  { %2103 = vmatpush.bf16.msra.mxu3 %v2997_v1  ;;  %v3104_v1 = vld [vmem:[%s4084_s3 + $0x110] sm:$0xf] }
 0x101   :  { %v1642_v7 = vmax.f32 %v1441_v3, 0.0  ;;  %2087 = vmatpush.bf16.msrb.mxu0 %v3201_v35  ;;  %v3098_v3 = vld [vmem:[%s4084_s3 + $0x108] sm:$0xf0] }
 0x103   :  { %2118 = vmatpush.bf16.msra.mxu1 %v3053_v20  ;;  %v3149_v20 = vor.u32 %v3462_v50, %v3146_v17 }
 0x104   :  { %2104 = vmatpush.bf16.msra.mxu3 %v2989_v15  ;;  %v3154_v15 = vld [vmem:[%s4084_s3 + $0x178] sm:$0xf0] }
 0x105   :  { %v3157_v16 = vor.u32 %v3464_v14, %v3154_v15  ;;  %2088 = vmatpush.bf16.msrb.mxu0 %v3193_v46  ;;  %v3160_v15 = vld [vmem:[%s4084_s3 + $0x180] sm:$0xf]  ;;  %v3472_v46 = vld [vmem:[%s4084_s3 + $0x1b4] sm:$0xf] }
 0x106   :  { %v1442_v5 = vpop.f32.mrf.mxu3  ;;  %v1482_v19 = vpop.f32.mrf.mxu0  ;;  %v3189_v37 = vor.u32 %v3472_v46, %v3186_v60 }
 0x107   :  { %2119 = vmatpush.bf16.msra.mxu1 %v3045_v31  ;;  %v1443_v6 = vadd.f32 %v1442_v5, %v1429_v2  ;;  %v1454_v55 = vpop.f32.mrf.mxu1  ;;  %v3130_v31 = vld [vmem:[%s4084_s3 + $0x148] sm:$0xf0]  ;;  %v3450_v2 = vld [vmem:[%s4084_s3 + $0x104] sm:$0xf] }
 0x108   :  { %2105 = vmatpush.bf16.msra.mxu3 %v2981_v25  ;;  %v3138_v25 = vld [vmem:[%s4084_s3 + $0x158] sm:$0xf0]  ;;  %v3133_v32 = vor.u32 %v3458_v30, %v3130_v31  ;;  %v1455_v42 = vadd.f32 %v1454_v55, %v259_v39 }
 0x109   :  { %v1646_v9 = vmax.f32 %v1443_v6, 0.0  ;;  %v3141_v26 = vor.u32 %v3460_v24, %v3138_v25  ;;  %2089 = vmatpush.bf16.msrb.mxu0 %v3185_v51  ;;  %v3101_v6 = vor.u32 %v3450_v2, %v3098_v3  ;;  %v3478_v25 = vld [vmem:[%s4084_s3 + $0x1e4] sm:$0xf] }
 0x10b   :  { %2120 = vmatpush.bf16.msra.mxu1 %v3037_v45  ;;  %v1650_v12 = vpack.c.bf16 %v1646_v9, %v1642_v7  ;;  %v3168_v7 = vld [vmem:[%s4084_s3 + $0x190] sm:$0xf]  ;;  %v3469_v9 = vld [vmem:[%s4084_s3 + $0x194] sm:$0xf0] }
 0x10c   :  { %2106 = vmatpush.bf16.msra.mxu3 %v2973_v38  ;;  %v3122_v38 = vld [vmem:[%s4084_s3 + $0x138] sm:$0xf0]  ;;  %v3169_v10 = vor.u32 %v3469_v9, %v3168_v7 }
 0x10d   :  { %2065 = vmatmul.bf16.vlgmr.msrb.gmra.mxu1 %v1650_v12  ;;  %v3125_v40 = vor.u32 %v3456_v54, %v3122_v38 }
 0x10e   :  { %v1484_v36 = vpop.f32.mrf.mxu0 }
 0x10f   :  { %2107 = vmatmul.bf16.vlgmr.msra.gmra.mxu3 %v3794_v43  ;;  %v3453_v43 = vld [vmem:[%s4084_s3 + $0x114] sm:$0xf0]  ;;  %v1456_v45 = vpop.f32.mrf.mxu1 }
 0x110   :  { %v3105_v4 = vor.u32 %v3453_v43, %v3104_v1  ;;  %v1457_v61 = vadd.f32 %v1456_v45, %v259_v39  ;;  %v3177_v43 = vor.u32 %v3471_v0, %v3176_v63  ;;  %v3474_v39 = vld [vmem:[%s4084_s3 + $0x1c4] sm:$0xf]  ;;  %v260_v45 = vperm.slane %v3673_v18, 3 }
 0x112   :  { %2077 = vmatpush.bf16.msrb.mxu2 %v3105_v4  ;;  %v1468_v34 = vpop.f32.mrf.mxu3  ;;  %2090 = vmatpush.bf16.msrb.mxu0 %v3177_v43 }
 0x113   :  { %v1496_v53 = vpop.f32.mrf.mxu2  ;;  %v1469_v59 = vadd.f32 %v1468_v34, %v1455_v42  ;;  %v3470_v42 = vld [vmem:[%s4084_s3 + $0x1a4] sm:$0xf] }
 0x115   :  { %v1483_v4 = vadd.f32 %v1482_v19, %v1469_v59  ;;  %v3480_v19 = vld [vmem:[%s4084_s3 + $0x1f4] sm:$0xf]  ;;  %v3466_v59 = vld [vmem:[%s4084_s3 + $0x184] sm:$0xf] }
 0x116   :  { %2078 = vmatpush.bf16.msrb.mxu2 %v3097_v13  ;;  %v1538_v52 = vpop.f32.mrf.mxu0  ;;  %2091 = vmatpush.bf16.msrb.mxu0 %v3169_v10 }
 0x11a   :  { %2127 = vmatpush.bf16.msra.mxu2 %v3157_v16  ;;  %v1470_v56 = vpop.f32.mrf.mxu3  ;;  %v3467_v16 = vld [vmem:[%s4084_s3 + $0x184] sm:$0xf0] }
 0x11b   :  { %v1471_v5 = vadd.f32 %v1470_v56, %v1457_v61  ;;  %v1498_v50 = vpop.f32.mrf.mxu2  ;;  %v3161_v17 = vor.u32 %v3467_v16, %v3160_v15  ;;  %v3468_v56 = vld [vmem:[%s4084_s3 + $0x194] sm:$0xf]  ;;  %v3162_v61 = vld [vmem:[%s4084_s3 + $0x188] sm:$0xf0] }
 0x11c   :  { %v3173_v58 = vor.u32 %v3468_v56, %v3170_v57 }
 0x11d   :  { %2121 = vmatmul.bf16.vlgmr.msra.gmra.mxu1 %v1650_v12  ;;  %v1497_v12 = vadd.f32 %v1496_v53, %v1483_v4  ;;  %v1485_v13 = vadd.f32 %v1484_v36, %v1471_v5  ;;  %2092 = vmatpush.bf16.msrb.mxu0 %v3161_v17 }
 0x11e   :  { %2128 = vmatpush.bf16.msra.mxu2 %v3149_v20  ;;  %v1540_v14 = vpop.f32.mrf.mxu0  ;;  %v3218_v20 = vld [vmem:[%s4084_s3 + $0x1f8] sm:$0xf0] }
 0x11f   :  { %v3221_v22 = vor.u32 %v3480_v19, %v3218_v20  ;;  %v1499_v55 = vadd.f32 %v1498_v50, %v1485_v13 }
 0x121   :  { %2141 = vmatpush.bf16.msra.mxu0 %v3221_v22 }
 0x122   :  { %2129 = vmatpush.bf16.msra.mxu2 %v3141_v26  ;;  %v3210_v26 = vld [vmem:[%s4084_s3 + $0x1e8] sm:$0xf0] }
 0x123   :  { %v3213_v28 = vor.u32 %v3478_v25, %v3210_v26 }
 0x125   :  { %2142 = vmatpush.bf16.msra.mxu0 %v3213_v28 }
 0x126   :  { %2130 = vmatpush.bf16.msra.mxu2 %v3133_v32  ;;  %v3476_v32 = vld [vmem:[%s4084_s3 + $0x1d4] sm:$0xf] }
 0x127   :  { %v1510_v1 = vpop.f32.mrf.mxu1  ;;  %v3205_v35 = vor.u32 %v3476_v32, %v3202_v8 }
 0x128   :  { %v1511_v21 = vadd.f32 %v1510_v1, %v1497_v12  ;;  %v3165_v1 = vor.u32 %v3466_v59, %v3162_v61 }
 0x129   :  { %2143 = vmatpush.bf16.msra.mxu0 %v3205_v35 }
 0x12a   :  { %2131 = vmatpush.bf16.msra.mxu2 %v3125_v40  ;;  %v1566_v34 = vpop.f32.mrf.mxu0  ;;  %v3194_v40 = vld [vmem:[%s4084_s3 + $0x1c8] sm:$0xf0] }
 0x12b   :  { %v3197_v44 = vor.u32 %v3474_v39, %v3194_v40 }
 0x12d   :  { %2144 = vmatpush.bf16.msra.mxu0 %v3197_v44 }
 0x12e   :  { %2132 = vmatpush.bf16.msra.mxu2 %v3117_v47  ;;  %v3178_v47 = vld [vmem:[%s4084_s3 + $0x1a8] sm:$0xf0] }
 0x12f   :  { %v1512_v23 = vpop.f32.mrf.mxu1  ;;  %v3181_v51 = vor.u32 %v3470_v42, %v3178_v47 }
 0x130   :  { %v1513_v27 = vadd.f32 %v1512_v23, %v1499_v55  ;;  %v1717_v23 = vld [vmem:[%s4085_s4] sm:$0x3] }
 0x131   :  { %2145 = vmatpush.bf16.msra.mxu0 %v3189_v37  ;;  %v1719_v26 = vperm.slane %v1717_v23, 0 }
 0x132   :  { %2133 = vmatpush.bf16.msra.mxu2 %v3109_v62  ;;  %v1524_v11 = vpop.f32.mrf.mxu3  ;;  %v1568_v49 = vpop.f32.mrf.mxu0 }
 0x133   :  { %v1525_v24 = vadd.f32 %v1524_v11, %v1511_v21  ;;  %v1552_v36 = vpop.f32.mrf.mxu2 }
 0x134   :  { %v1553_v48 = vadd.f32 %v1552_v36, %v260_v45 }
 0x135   :  { %v1539_v30 = vadd.f32 %v1538_v52, %v1525_v24  ;;  %2146 = vmatpush.bf16.msra.mxu0 %v3181_v51 }
 0x136   :  { %2134 = vmatpush.bf16.msra.mxu2 %v3101_v6  ;;  %v1567_v53 = vadd.f32 %v1566_v34, %v1553_v48 }
 0x137   :  { %v1643_v54 = vmax.f32 %v1539_v30, 0.0 }
 0x139   :  { %2147 = vmatpush.bf16.msra.mxu0 %v3173_v58 }
 0x13a   :  { %v1526_v29 = vpop.f32.mrf.mxu3 }
 0x13b   :  { %v1527_v31 = vadd.f32 %v1526_v29, %v1513_v27  ;;  %v1554_v52 = vpop.f32.mrf.mxu2 }
 0x13c   :  { %v1555_v43 = vadd.f32 %v1554_v52, %v260_v45 }
 0x13d   :  { %v1541_v33 = vadd.f32 %v1540_v14, %v1527_v31  ;;  %2148 = vmatpush.bf16.msra.mxu0 %v3165_v1 }
 0x13e   :  { %v1569_v5 = vadd.f32 %v1568_v49, %v1555_v43 }
 0x13f   :  { %v1647_v38 = vmax.f32 %v1541_v33, 0.0 }
 0x141   :  { %v1651_v41 = vpack.c.bf16 %v1647_v38, %v1643_v54  ;;  %v1720_v54 = vperm.slane %v1717_v23, 1 }
 0x143   :  { %2079 = vmatmul.bf16.vlgmr.msrb.gmra.mxu2 %v1651_v41 }
 0x147   :  { %v1580_v18 = vpop.f32.mrf.mxu1 }
 0x148   :  { %v1581_v63 = vadd.f32 %v1580_v18, %v1567_v53 }
 0x14a   :  { %v1622_v3 = vpop.f32.mrf.mxu0 }
 0x14f   :  { %v1582_v62 = vpop.f32.mrf.mxu1 }
 0x150   :  { %v1583_v7 = vadd.f32 %v1582_v62, %v1569_v5 }
 0x152   :  { %v1594_v0 = vpop.f32.mrf.mxu3  ;;  %v1624_v15 = vpop.f32.mrf.mxu0 }
 0x153   :  { %v1608_v2 = vpop.f32.mrf.mxu2  ;;  %v1595_v4 = vadd.f32 %v1594_v0, %v1581_v63  ;;  %2135 = vmatmul.bf16.vlgmr.msra.gmra.mxu2 %v1651_v41 }
 0x155   :  { %v1609_v6 = vadd.f32 %v1608_v2, %v1595_v4 }
 0x157   :  { %v1636_v9 = vpop.f32.mrf.mxu1  ;;  %v1623_v12 = vadd.f32 %v1622_v3, %v1609_v6 }
 0x159   :  { %v1637_v50 = vadd.f32 %v1636_v9, %v1623_v12 }
 0x15a   :  { %v1596_v10 = vpop.f32.mrf.mxu3 }
 0x15b   :  { %v1597_v11 = vadd.f32 %v1596_v10, %v1583_v7  ;;  %v1610_v13 = vpop.f32.mrf.mxu2  ;;  %v1644_v20 = vmax.f32 %v1637_v50, 0.0 }
 0x15d   :  { %v1611_v14 = vadd.f32 %v1610_v13, %v1597_v11 }
 0x15f   :  { %v1625_v16 = vadd.f32 %v1624_v15, %v1611_v14  ;;  %v1638_v17 = vpop.f32.mrf.mxu1 }
 0x161   :  { %v1639_v19 = vadd.f32 %v1638_v17, %v1625_v16 }
 0x163   :  { %v1648_v21 = vmax.f32 %v1639_v19, 0.0 }
 0x165   :  { %v1652_v22 = vpack.c.bf16 %v1648_v21, %v1644_v20 }
 0x167   :  { %2093 = vmatmul.bf16.vlgmr.msrb.gmra.mxu0 %v1652_v22 }
 0x172   :  { %v2052_v55 = vpop.f32.mrf.mxu3 }
 0x173   :  { %v2053_v27 = vadd.f32 %v2052_v55, %v1719_v26 }
 0x177   :  { %2149 = vmatmul.bf16.vlgmr.msra.gmra.mxu0 %v1652_v22 }
 0x17a   :  { %v2054_v29 = vpop.f32.mrf.mxu3 }
 0x17b   :  { %v2055_v34 = vadd.f32 %v2054_v29, %v1719_v26 }
 0x18a   :  { %v2066_v24 = vpop.f32.mrf.mxu1 }
 0x18b   :  { %v2067_v28 = vadd.f32 %v2066_v24, %v2053_v27 }
 0x192   :  { %v2068_v30 = vpop.f32.mrf.mxu1  ;;  %v2108_v36 = vpop.f32.mrf.mxu3 }
 0x193   :  { %v2069_v35 = vadd.f32 %v2068_v30, %v2055_v34  ;;  %v2109_v45 = vadd.f32 %v2108_v36, %v1720_v54 }
 0x19a   :  { %v2122_v39 = vpop.f32.mrf.mxu1  ;;  %v2110_v37 = vpop.f32.mrf.mxu3 }
 0x19b   :  { %v2123_v46 = vadd.f32 %v2122_v39, %v2109_v45  ;;  %v2111_v48 = vadd.f32 %v2110_v37, %v1720_v54 }
 0x1a2   :  { %v2124_v18 = vpop.f32.mrf.mxu1 }
 0x1a3   :  { %v2125_v51 = vadd.f32 %v2124_v18, %v2111_v48 }
 0x1c6   :  { %v2080_v25 = vpop.f32.mrf.mxu2 }
 0x1c7   :  { %v2081_v31 = vadd.f32 %v2080_v25, %v2067_v28 }
 0x1ce   :  { %v2082_v32 = vpop.f32.mrf.mxu2 }
 0x1cf   :  { %v2083_v38 = vadd.f32 %v2082_v32, %v2069_v35 }
 0x1d6   :  { %v2136_v44 = vpop.f32.mrf.mxu2 }
 0x1d7   :  { %v2137_v60 = vadd.f32 %v2136_v44, %v2123_v46 }
 0x1de   :  { %v2138_v49 = vpop.f32.mrf.mxu2 }
 0x1df   :  { %v2139_v52 = vadd.f32 %v2138_v49, %v2125_v51 }
 0x1e4   :  { %v2094_v8 = vpop.f32.mrf.mxu0 }
 0x1e5   :  { %v2095_v33 = vadd.f32 %v2094_v8, %v2081_v31 }
 0x1e7   :  { %2155 = vst [vmem:[#allocation5] sm:$0xff] %v2095_v33 }
 0x1ec   :  { %v2096_v40 = vpop.f32.mrf.mxu0 }
 0x1ed   :  { %v2097_v41 = vadd.f32 %v2096_v40, %v2083_v38 }
 0x1ef   :  { %2157 = vst [vmem:[#allocation5 + $0x10] sm:$0xff] %v2097_v41 }
 0x1f4   :  { %v2150_v42 = vpop.f32.mrf.mxu0 }
 0x1f5   :  { %v2151_v47 = vadd.f32 %v2150_v42, %v2137_v60 }
 0x1f7   :  { %2156 = vst [vmem:[#allocation5 + $0x8] sm:$0xff] %v2151_v47 }
 0x1fc   :  { %v2152_v53 = vpop.f32.mrf.mxu0 }
 0x1fd   :  { %v2153_v56 = vadd.f32 %v2152_v53, %v2139_v52 }
 0x1ff   :  { %2158 = vst [vmem:[#allocation5 + $0x18] sm:$0xff] %v2153_v56 }
 0x200   :  { %2162 = vsyncadd [#allocation4], 256  ;;  %s2165_s0 = sshll.u32 %s4086_s5, 4  ;;  %s3541_s28 = smov [#allocation5]   ;;  %s2166_s0 = int_to_ptr.hbm [resolvable:$true] %s2165_s0 }
 0x201   :  { %s2163_s29 = sshll.u32 %s3541_s28, 4  ;;  %s2164_s29 = int_to_ptr.vmem [resolvable:$true] %s2163_s29 }
 0x202   :  { %2171 = dma.vmem_to_hbm [thread:$0]  %s2164_s29, 256, %s2166_s0, [#allocation4], %s3539_s23, %s3539_s23, %s3540_s24  }
 0x203   :  { %3536 = dma.done.wait [#allocation4], 512  }
 0x204   :  { %3537 = vsyncadd [#allocation4], 4294966784 }
 0x205   :  { %2176 = vsyncpa [#allocation3], 1 }
 0x206   :  { %2177 = vsyncpa [#allocation4], 1 }

</bundles_post_ra>
